<compile_context>
chip_gen: v7x
topology: tpu7x:2x2x1
jax: 0.10.0
libtpu: 0.0.40
codegen_flags: <defaults>
</compile_context>

<pallas_src>
import math
import functools

import jax
import jax.numpy as jnp
from jax.experimental import pallas as pl
from jax.experimental.pallas import tpu as pltpu


# ---------------------------------------------------------------------------
# Pass 1: LayerNorm + fused Q|K|V projection, emitted in a head-major layout.
# ---------------------------------------------------------------------------
def _ln_qkv_kernel(x_ref, wqkv_ref, bqkv_ref, gamma_ref, beta_ref,
                   xln_ref, qkv_ref, *, num_heads, head_dim, eps, compute_dtype):
    x = x_ref[0]                                          # (Ts, H) f32
    Ts, H = x.shape

    # LayerNorm (biased variance, eps inside sqrt) -- matches torch.nn.LayerNorm.
    mean = jnp.mean(x, axis=-1, keepdims=True)
    var = jnp.mean((x - mean) ** 2, axis=-1, keepdims=True)
    x_ln = (x - mean) * jax.lax.rsqrt(var + eps) * gamma_ref[0] + beta_ref[0]
    xln_ref[0] = x_ln.astype(xln_ref.dtype)               # residual = post-LN x

    # Fused Q|K|V projection: one (Ts,H)x(H,3H) MXU pass; 1/sqrt(head_dim) is
    # already folded into the Q columns of wqkv/bqkv wrapper-side.
    qkv = jnp.dot(x_ln.astype(compute_dtype), wqkv_ref[...],
                  preferred_element_type=jnp.float32) + bqkv_ref[0]   # (Ts,3H) f32

    # Relayout ONCE here (instead of once per kv step in the attention pass):
    # (Ts, 3H) -> (3*nh, Ts, hd); rows [0:nh)=Q heads, [nh:2nh)=K, [2nh:3nh)=V.
    qkv_h = pltpu.einshape("sgd->gsd", qkv.reshape(Ts, 3 * num_heads, head_dim))
    qkv_ref[0] = qkv_h.astype(qkv_ref.dtype)


# ---------------------------------------------------------------------------
# Pass 2: flash-style attention (online softmax) + dense output proj + residual.
# Grid = (batch, q-tile, kv-tile); kv-tile is the reduction ("arbitrary") axis.
# ---------------------------------------------------------------------------
def _flash_attn_out_kernel(q_ref, k_ref, v_ref, xln_ref, wd_ref, bd_ref, o_ref,
                           m_sc, l_sc, acc_sc, *, compute_dtype, recip_approx):
    ki = pl.program_id(2)

    @pl.when(ki == 0)
    def _():
        m_sc[...] = jnp.full_like(m_sc, -jnp.inf)
        l_sc[...] = jnp.zeros_like(l_sc)
        acc_sc[...] = jnp.zeros_like(acc_sc)

    q = q_ref[0]                                          # (nh, Tq, hd)
    k = k_ref[0]                                          # (nh, Tk, hd)
    v = v_ref[0]                                          # (nh, Tk, hd)

    # Scores for this (q-tile, kv-tile) pair only: (nh, Tq, Tk) f32.  The full
    # (nh, S, S) tensor is never materialized.
    s = jnp.einsum("hqd,hkd->hqk", q, k, preferred_element_type=jnp.float32)

    m_prev = m_sc[...]
    m_new = jnp.maximum(m_prev, jnp.max(s, axis=-1, keepdims=True))
    alpha = jnp.exp(m_prev - m_new)
    p = jnp.exp(s - m_new)
    l_sc[...] = alpha * l_sc[...] + jnp.sum(p, axis=-1, keepdims=True)
    acc_sc[...] = alpha * acc_sc[...] + jnp.einsum(
        "hqk,hkd->hqd", p.astype(compute_dtype), v,
        preferred_element_type=jnp.float32)
    m_sc[...] = m_new

    @pl.when(ki == pl.num_programs(2) - 1)
    def _():
        nh, tq, hd = acc_sc.shape
        ctx = acc_sc[...] * pl.reciprocal(l_sc[...], approx=recip_approx)
        # (nh, Tq, hd) -> (Tq, H): one relayout per q-tile (not per kv step).
        ctx2 = pltpu.einshape("hqd->qhd", ctx).reshape(tq, nh * hd)
        out = jnp.dot(ctx2.astype(compute_dtype), wd_ref[...],
                      preferred_element_type=jnp.float32)
        out = out + bd_ref[0] + xln_ref[0]                # residual = post-LN x
        o_ref[0] = out.astype(o_ref.dtype)


# ---------------------------------------------------------------------------
# Wrapper
# ---------------------------------------------------------------------------
def _pick_tile(s, preferred=(512, 256, 128, 64, 32, 16, 8)):
    for t in preferred:
        if t <= s and s % t == 0:
            return t
    return s


def _vmem_limit_bytes(per_step_estimate):
    """Generation-aware scoped-VMEM limit: never request the full physical VMEM
    (leave ~16 MiB headroom for pipeline buffers / Mosaic internal scratch),
    but let 128 MiB parts (v5e/v6e) go well beyond v7x's 64 MiB."""
    try:
        physical = int(pltpu.get_tpu_info().vmem_capacity_bytes)
    except Exception:
        physical = 64 << 20            # conservative (v7x-sized) fallback
    cap = max(physical - (16 << 20), 24 << 20)
    return int(min(max(2 * per_step_estimate, 32 << 20), cap))


def graph_attention(x, params, *, num_heads, eps=1e-12,
                    compute_dtype=jnp.bfloat16,
                    q_tile=None, kv_tile=None,
                    single_buffer_weights=True):
    """x: (B, S, H) float32.  params: weights stored (in_features, out_features)
    and (H,) biases.  Eval-mode GraphAttention forward."""
    B, S, H = x.shape
    if H % num_heads:
        raise ValueError("hidden size must be a multiple of num_heads")
    nh = num_heads
    hd = H // nh
    cdt = jnp.dtype(compute_dtype)
    f32 = jnp.dtype(jnp.float32)
    scale = 1.0 / math.sqrt(hd)

    tq = q_tile if q_tile is not None else _pick_tile(S)
    tk = kv_tile if kv_tile is not None else _pick_tile(S)
    assert S % tq == 0 and S % tk == 0, "q_tile / kv_tile must divide S"

    # Fused QKV weight/bias; attention scale folded into the Q slice so the
    # kernel never rescales the score tiles.
    w_qkv = jnp.concatenate([params["wq"] * scale, params["wk"], params["wv"]],
                            axis=1).astype(cdt)                       # (H, 3H)
    b_qkv = jnp.concatenate([params["bq"] * scale, params["bk"], params["bv"]]
                            ).reshape(1, 3 * H).astype(f32)
    wd = params["wd"].astype(cdt)                                     # (H, H)
    bd = params["bd"].reshape(1, H).astype(f32)
    gamma = params["ln_gamma"].reshape(1, H).astype(f32)
    beta = params["ln_beta"].reshape(1, H).astype(f32)

    # Per-step VMEM estimates: resident weights counted ONCE (single-buffered),
    # activation blocks double-buffered, plus in-kernel temporaries.
    cb, fb = cdt.itemsize, 4
    est1 = (H * 3 * H * cb + 5 * H * fb
            + 2 * tq * H * fb + 2 * tq * H * fb + 2 * tq * 3 * H * cb
            + 4 * tq * H * fb + tq * 3 * H * (fb + cb))
    est2 = (H * H * cb + H * fb
            + 2 * (tq + 2 * tk) * H * cb + 4 * tq * H * fb
            + nh * tq * (hd + 2) * fb
            + nh * tq * tk * (3 * fb + cb) + tq * H * (2 * fb + cb))
    vmem1 = _vmem_limit_bytes(est1)
    vmem2 = _vmem_limit_bytes(est2)

    def run(single_buffer):
        pm = {"pipeline_mode": pl.Buffered(1)} if single_buffer else {}

        # ---------------- pass 1: LayerNorm + fused QKV ----------------
        ln_qkv = pl.pallas_call(
            functools.partial(_ln_qkv_kernel, num_heads=nh, head_dim=hd,
                              eps=eps, compute_dtype=cdt),
            out_shape=(jax.ShapeDtypeStruct((B, S, H), jnp.float32),    # x_ln
                       jax.ShapeDtypeStruct((B, 3 * nh, S, hd), cdt)),  # QKV (head-major)
            grid_spec=pltpu.PrefetchScalarGridSpec(
                num_scalar_prefetch=0,
                grid=(B, S // tq),
                in_specs=[
                    pl.BlockSpec((1, tq, H), lambda b, si: (b, si, 0)),
                    pl.BlockSpec((H, 3 * H), lambda b, si: (0, 0), **pm),
                    pl.BlockSpec((1, 3 * H), lambda b, si: (0, 0), **pm),
                    pl.BlockSpec((1, H), lambda b, si: (0, 0), **pm),
                    pl.BlockSpec((1, H), lambda b, si: (0, 0), **pm),
                ],
                out_specs=[
                    pl.BlockSpec((1, tq, H), lambda b, si: (b, si, 0)),
                    pl.BlockSpec((1, 3 * nh, tq, hd), lambda b, si: (b, 0, si, 0)),
                ],
            ),
            compiler_params=pltpu.CompilerParams(
                dimension_semantics=("parallel", "parallel"),
                vmem_limit_bytes=vmem1),
        )
        x_ln, qkv_h = ln_qkv(x, w_qkv, b_qkv, gamma, beta)

        # ------ pass 2: flash attention + output projection + residual ------
        flash = pl.pallas_call(
            functools.partial(_flash_attn_out_kernel, compute_dtype=cdt,
                              recip_approx=bool(cdt != f32)),
            out_shape=jax.ShapeDtypeStruct((B, S, H), x.dtype),
            grid_spec=pltpu.PrefetchScalarGridSpec(
                num_scalar_prefetch=0,
                grid=(B, S // tq, S // tk),           # kv (reduction) axis last
                in_specs=[
                    pl.BlockSpec((1, nh, tq, hd), lambda b, qi, ki: (b, 0, qi, 0)),
                    pl.BlockSpec((1, nh, tk, hd), lambda b, qi, ki: (b, 1, ki, 0)),
                    pl.BlockSpec((1, nh, tk, hd), lambda b, qi, ki: (b, 2, ki, 0)),
                    pl.BlockSpec((1, tq, H), lambda b, qi, ki: (b, qi, 0)),
                    pl.BlockSpec((H, H), lambda b, qi, ki: (0, 0), **pm),
                    pl.BlockSpec((1, H), lambda b, qi, ki: (0, 0), **pm),
                ],
                out_specs=pl.BlockSpec((1, tq, H), lambda b, qi, ki: (b, qi, 0)),
                scratch_shapes=[
                    pltpu.VMEM((nh, tq, 1), jnp.float32),   # running max
                    pltpu.VMEM((nh, tq, 1), jnp.float32),   # running denom
                    pltpu.VMEM((nh, tq, hd), jnp.float32),  # running context
                ],
            ),
            compiler_params=pltpu.CompilerParams(
                dimension_semantics=("parallel", "parallel", "arbitrary"),
                vmem_limit_bytes=vmem2),
        )
        return flash(qkv_h, qkv_h, qkv_h, x_ln, wd, bd)

    if not single_buffer_weights:
        return run(False)
    try:
        return run(True)
    except Exception:
        # TODO(synk): pl.Buffered(1) single-buffering rejected by this jax/libtpu
        # combo; fall back to default double-buffered resident weights.
        return run(False)


# ---------------------------------------------------------------------------
# Pure-JAX reference (identical semantics) + parameter init + demo
# ---------------------------------------------------------------------------
def graph_attention_ref(x, params, *, num_heads, eps=1e-12):
    B, S, H = x.shape
    hd = H // num_heads
    mean = jnp.mean(x, axis=-1, keepdims=True)
    var = jnp.mean((x - mean) ** 2, axis=-1, keepdims=True)
    x_ln = (x - mean) / jnp.sqrt(var + eps) * params["ln_gamma"] + params["ln_beta"]

    def proj(w, b):
        y = x_ln @ w + b                                              # (B, S, H)
        return y.reshape(B, S, num_heads, hd).transpose(0, 2, 1, 3)   # (B, nh, S, hd)

    q = proj(params["wq"], params["bq"])
    k = proj(params["wk"], params["bk"])
    v = proj(params["wv"], params["bv"])
    scores = jnp.einsum("bhqd,bhkd->bhqk", q, k) / math.sqrt(hd)
    p = jax.nn.softmax(scores, axis=-1)
    ctx = jnp.einsum("bhqk,bhkd->bhqd", p, v)
    ctx = ctx.transpose(0, 2, 1, 3).reshape(B, S, H)
    return ctx @ params["wd"] + params["bd"] + x_ln


def init_params(key, hidden_size):
    ks = jax.random.split(key, 8)
    s = 1.0 / math.sqrt(hidden_size)
    H = hidden_size
    return {
        "wq": jax.random.uniform(ks[0], (H, H), jnp.float32, -s, s),
        "bq": jax.random.uniform(ks[1], (H,), jnp.float32, -s, s),
        "wk": jax.random.uniform(ks[2], (H, H), jnp.float32, -s, s),
        "bk": jax.random.uniform(ks[3], (H,), jnp.float32, -s, s),
        "wv": jax.random.uniform(ks[4], (H, H), jnp.float32, -s, s),
        "bv": jax.random.uniform(ks[5], (H,), jnp.float32, -s, s),
        "wd": jax.random.uniform(ks[6], (H, H), jnp.float32, -s, s),
        "bd": jax.random.uniform(ks[7], (H,), jnp.float32, -s, s),
        "ln_gamma": jnp.ones((H,), jnp.float32),
        "ln_beta": jnp.zeros((H,), jnp.float32),
    }


if __name__ == "__main__":
    B, S, H, NUM_HEADS = 2, 32, 128, 4      # H multiple of 128 -> lane-dense blocks

    key = jax.random.PRNGKey(0)
    k_x, k_p = jax.random.split(key)
    x = jax.random.normal(k_x, (B, S, H), jnp.float32)
    params = init_params(k_p, H)

    ref = graph_attention_ref(x, params, num_heads=NUM_HEADS)

    # f32 compute path (exact reciprocal): tight numerical check of the
    # flash/online-softmax restructuring (2x2 q/kv tiles -> multi-step softmax).
    out_f32 = jax.block_until_ready(graph_attention(
        x, params, num_heads=NUM_HEADS, compute_dtype=jnp.float32,
        q_tile=16, kv_tile=16))
    assert out_f32.shape == (B, S, H)
    err32 = float(jnp.max(jnp.abs(out_f32 - ref)))
    assert err32 < 5e-4, f"f32 path max abs err {err32}"

    # Default bf16-matmul path (MXU-native on v5e/v6e/v7x): loose check.
    out_bf16 = jax.block_until_ready(graph_attention(
        x, params, num_heads=NUM_HEADS, q_tile=16, kv_tile=16))
    err16 = float(jnp.max(jnp.abs(out_bf16 - ref)))
    assert err16 < 1e-1, f"bf16 path max abs err {err16}"

    print("KERNEL_OK")
</pallas_src>

<mosaic_0001>
module attributes {stable_mosaic.version = 11 : i64} {
  func.func @_ln_qkv_kernel(%arg0: i32, %arg1: i32, %arg2: memref<1x16x128xf32, #tpu.memory_space<vmem>>, %arg3: memref<128x384xf32, #tpu.memory_space<vmem>>, %arg4: memref<1x384xf32, #tpu.memory_space<vmem>>, %arg5: memref<1x128xf32, #tpu.memory_space<vmem>>, %arg6: memref<1x128xf32, #tpu.memory_space<vmem>>, %arg7: memref<1x16x128xf32, #tpu.memory_space<vmem>>, %arg8: memref<1x12x16x32xf32, #tpu.memory_space<vmem>>) attributes {dimension_semantics = [#tpu.dimension_semantics<parallel>, #tpu.dimension_semantics<parallel>], iteration_bounds = array<i64: 2, 2>, scalar_prefetch = 0 : i64, scratch_operands = 0 : i64, tpu.core_type = #tpu.core_type<tc>, window_params = [{transform_indices = @transform_0, window_bounds = array<i64: 1, 16, 128>}, {pipeline_mode = #tpu.pipeline_mode<synchronous>, transform_indices = @transform_1, window_bounds = array<i64: 128, 384>}, {pipeline_mode = #tpu.pipeline_mode<synchronous>, transform_indices = @transform_2, window_bounds = array<i64: 1, 384>}, {pipeline_mode = #tpu.pipeline_mode<synchronous>, transform_indices = @transform_3, window_bounds = array<i64: 1, 128>}, {pipeline_mode = #tpu.pipeline_mode<synchronous>, transform_indices = @transform_4, window_bounds = array<i64: 1, 128>}, {transform_indices = @transform_5, window_bounds = array<i64: 1, 16, 128>}, {transform_indices = @transform_6, window_bounds = array<i64: 1, 12, 16, 32>}]} {
    %c0 = arith.constant 0 : index
    %c0_0 = arith.constant 0 : index
    %c0_1 = arith.constant 0 : index
    %0 = vector.load %arg2[%c0, %c0_0, %c0_1] : memref<1x16x128xf32, #tpu.memory_space<vmem>>, vector<1x16x128xf32>
    %1 = vector.shape_cast %0 : vector<1x16x128xf32> to vector<16x128xf32>
    %cst = arith.constant dense<0.000000e+00> : vector<16xf32>
    %2 = vector.multi_reduction <add>, %1, %cst [1] : vector<16x128xf32> to vector<16xf32>
    %3 = vector.shape_cast %2 : vector<16xf32> to vector<16x1xf32>
    %cst_2 = arith.constant 1.280000e+02 : f32
    %4 = vector.broadcast %cst_2 : f32 to vector<16x1xf32>
    %5 = arith.divf %3, %4 : vector<16x1xf32>
    %6 = vector.broadcast %5 : vector<16x1xf32> to vector<16x128xf32>
    %7 = arith.subf %1, %6 : vector<16x128xf32>
    %8 = arith.mulf %7, %7 : vector<16x128xf32>
    %cst_3 = arith.constant dense<0.000000e+00> : vector<16xf32>
    %9 = vector.multi_reduction <add>, %8, %cst_3 [1] : vector<16x128xf32> to vector<16xf32>
    %10 = vector.shape_cast %9 : vector<16xf32> to vector<16x1xf32>
    %cst_4 = arith.constant 1.280000e+02 : f32
    %11 = vector.broadcast %cst_4 : f32 to vector<16x1xf32>
    %12 = arith.divf %10, %11 : vector<16x1xf32>
    %13 = vector.broadcast %5 : vector<16x1xf32> to vector<16x128xf32>
    %14 = arith.subf %1, %13 : vector<16x128xf32>
    %cst_5 = arith.constant 9.99999996E-13 : f32
    %15 = vector.broadcast %cst_5 : f32 to vector<16x1xf32>
    %16 = arith.addf %12, %15 : vector<16x1xf32>
    %17 = math.rsqrt %16 : vector<16x1xf32>
    %18 = vector.broadcast %17 : vector<16x1xf32> to vector<16x128xf32>
    %19 = arith.mulf %14, %18 : vector<16x128xf32>
    %c0_6 = arith.constant 0 : index
    %c0_7 = arith.constant 0 : index
    %20 = vector.load %arg5[%c0_6, %c0_7] : memref<1x128xf32, #tpu.memory_space<vmem>>, vector<1x128xf32>
    %21 = vector.shape_cast %20 : vector<1x128xf32> to vector<128xf32>
    %22 = vector.shape_cast %21 : vector<128xf32> to vector<1x128xf32>
    %23 = vector.broadcast %22 : vector<1x128xf32> to vector<16x128xf32>
    %24 = arith.mulf %19, %23 : vector<16x128xf32>
    %c0_8 = arith.constant 0 : index
    %c0_9 = arith.constant 0 : index
    %25 = vector.load %arg6[%c0_8, %c0_9] : memref<1x128xf32, #tpu.memory_space<vmem>>, vector<1x128xf32>
    %26 = vector.shape_cast %25 : vector<1x128xf32> to vector<128xf32>
    %27 = vector.shape_cast %26 : vector<128xf32> to vector<1x128xf32>
    %28 = vector.broadcast %27 : vector<1x128xf32> to vector<16x128xf32>
    %29 = arith.addf %24, %28 : vector<16x128xf32>
    %c0_10 = arith.constant 0 : index
    %c0_11 = arith.constant 0 : index
    %c0_12 = arith.constant 0 : index
    %30 = vector.load %arg7[%c0_10, %c0_11, %c0_12] : memref<1x16x128xf32, #tpu.memory_space<vmem>>, vector<1x16x128xf32>
    %31 = vector.shape_cast %30 : vector<1x16x128xf32> to vector<16x128xf32>
    %32 = vector.shape_cast %29 : vector<16x128xf32> to vector<1x16x128xf32>
    tpu.vector_store %arg7[%c0_10, %c0_11, %c0_12], %32 {strides = array<i32>} : memref<1x16x128xf32, #tpu.memory_space<vmem>>, vector<1x16x128xf32>,
    %c0_13 = arith.constant 0 : index
    %c0_14 = arith.constant 0 : index
    %33 = vector.load %arg3[%c0_13, %c0_14] : memref<128x384xf32, #tpu.memory_space<vmem>>, vector<128x384xf32>
    %cst_15 = arith.constant dense<0.000000e+00> : vector<16x384xf32>
    %34 = tpu.matmul %29, %33, %cst_15 {dimension_numbers = #tpu.dot_dimension_numbers<[1], [0], [0], [1], [0, 0, 1, 1], [], []>} : vector<16x128xf32>, vector<128x384xf32>, vector<16x384xf32> -> vector<16x384xf32>
    %c0_16 = arith.constant 0 : index
    %c0_17 = arith.constant 0 : index
    %35 = vector.load %arg4[%c0_16, %c0_17] : memref<1x384xf32, #tpu.memory_space<vmem>>, vector<1x384xf32>
    %36 = vector.shape_cast %35 : vector<1x384xf32> to vector<384xf32>
    %37 = vector.shape_cast %36 : vector<384xf32> to vector<1x384xf32>
    %38 = vector.broadcast %37 : vector<1x384xf32> to vector<16x384xf32>
    %39 = arith.addf %34, %38 : vector<16x384xf32>
    %40 = vector.shape_cast %39 : vector<16x384xf32> to vector<16x12x32xf32>
    %41 = tpu.transpose %40, [1, 0, 2] : vector<16x12x32xf32> -> vector<12x16x32xf32>
    %c0_18 = arith.constant 0 : index
    %c0_19 = arith.constant 0 : index
    %c0_20 = arith.constant 0 : index
    %c0_21 = arith.constant 0 : index
    %42 = vector.load %arg8[%c0_18, %c0_19, %c0_20, %c0_21] : memref<1x12x16x32xf32, #tpu.memory_space<vmem>>, vector<1x12x16x32xf32>
    %43 = vector.shape_cast %42 : vector<1x12x16x32xf32> to vector<12x16x32xf32>
    %44 = vector.shape_cast %41 : vector<12x16x32xf32> to vector<1x12x16x32xf32>
    tpu.vector_store %arg8[%c0_18, %c0_19, %c0_20, %c0_21], %44 {strides = array<i32>} : memref<1x12x16x32xf32, #tpu.memory_space<vmem>>, vector<1x12x16x32xf32>,
    return
  }
  func.func @transform_0(%arg0: i32, %arg1: i32) -> (i32, i32, i32) {
    %c0_i32 = arith.constant 0 : i32
    %c0_i32_0 = arith.constant 0 : i32
    return %arg0, %arg1, %c0_i32 : i32, i32, i32
  }
  func.func @transform_1(%arg0: i32, %arg1: i32) -> (i32, i32) {
    %c0_i32 = arith.constant 0 : i32
    %c0_i32_0 = arith.constant 0 : i32
    %c0_i32_1 = arith.constant 0 : i32
    return %c0_i32, %c0_i32_0 : i32, i32
  }
  func.func @transform_2(%arg0: i32, %arg1: i32) -> (i32, i32) {
    %c0_i32 = arith.constant 0 : i32
    %c0_i32_0 = arith.constant 0 : i32
    %c0_i32_1 = arith.constant 0 : i32
    return %c0_i32, %c0_i32_0 : i32, i32
  }
  func.func @transform_3(%arg0: i32, %arg1: i32) -> (i32, i32) {
    %c0_i32 = arith.constant 0 : i32
    %c0_i32_0 = arith.constant 0 : i32
    %c0_i32_1 = arith.constant 0 : i32
    return %c0_i32, %c0_i32_0 : i32, i32
  }
  func.func @transform_4(%arg0: i32, %arg1: i32) -> (i32, i32) {
    %c0_i32 = arith.constant 0 : i32
    %c0_i32_0 = arith.constant 0 : i32
    %c0_i32_1 = arith.constant 0 : i32
    return %c0_i32, %c0_i32_0 : i32, i32
  }
  func.func @transform_5(%arg0: i32, %arg1: i32) -> (i32, i32, i32) {
    %c0_i32 = arith.constant 0 : i32
    %c0_i32_0 = arith.constant 0 : i32
    return %arg0, %arg1, %c0_i32 : i32, i32, i32
  }
  func.func @transform_6(%arg0: i32, %arg1: i32) -> (i32, i32, i32, i32) {
    %c0_i32 = arith.constant 0 : i32
    %c0_i32_0 = arith.constant 0 : i32
    %c0_i32_1 = arith.constant 0 : i32
    return %arg0, %c0_i32, %arg1, %c0_i32_0 : i32, i32, i32, i32
  }
}

module attributes {stable_mosaic.version = 11 : i64} {
  func.func @_ln_qkv_kernel(%arg0: i32, %arg1: i32, %arg2: memref<1x16x128xf32, #tpu.memory_space<vmem>>, %arg3: memref<128x384xf32, #tpu.memory_space<vmem>>, %arg4: memref<1x384xf32, #tpu.memory_space<vmem>>, %arg5: memref<1x128xf32, #tpu.memory_space<vmem>>, %arg6: memref<1x128xf32, #tpu.memory_space<vmem>>, %arg7: memref<1x16x128xf32, #tpu.memory_space<vmem>>, %arg8: memref<1x12x16x32xf32, #tpu.memory_space<vmem>>) attributes {dimension_semantics = [#tpu.dimension_semantics<parallel>, #tpu.dimension_semantics<parallel>], iteration_bounds = array<i64: 2, 2>, scalar_prefetch = 0 : i64, scratch_operands = 0 : i64, tpu.core_type = #tpu.core_type<tc>, window_params = [{transform_indices = @transform_0, window_bounds = array<i64: 1, 16, 128>}, {pipeline_mode = #tpu.pipeline_mode<synchronous>, transform_indices = @transform_1, window_bounds = array<i64: 128, 384>}, {pipeline_mode = #tpu.pipeline_mode<synchronous>, transform_indices = @transform_2, window_bounds = array<i64: 1, 384>}, {pipeline_mode = #tpu.pipeline_mode<synchronous>, transform_indices = @transform_3, window_bounds = array<i64: 1, 128>}, {pipeline_mode = #tpu.pipeline_mode<synchronous>, transform_indices = @transform_4, window_bounds = array<i64: 1, 128>}, {transform_indices = @transform_5, window_bounds = array<i64: 1, 16, 128>}, {transform_indices = @transform_6, window_bounds = array<i64: 1, 12, 16, 32>}]} {
    %c0 = arith.constant 0 : index
    %c0_0 = arith.constant 0 : index
    %c0_1 = arith.constant 0 : index
    %0 = vector.load %arg2[%c0, %c0_0, %c0_1] : memref<1x16x128xf32, #tpu.memory_space<vmem>>, vector<1x16x128xf32>
    %1 = vector.shape_cast %0 : vector<1x16x128xf32> to vector<16x128xf32>
    %cst = arith.constant dense<0.000000e+00> : vector<16xf32>
    %2 = vector.multi_reduction <add>, %1, %cst [1] : vector<16x128xf32> to vector<16xf32>
    %3 = vector.shape_cast %2 : vector<16xf32> to vector<16x1xf32>
    %cst_2 = arith.constant 1.280000e+02 : f32
    %4 = vector.broadcast %cst_2 : f32 to vector<16x1xf32>
    %5 = arith.divf %3, %4 : vector<16x1xf32>
    %6 = vector.broadcast %5 : vector<16x1xf32> to vector<16x128xf32>
    %7 = arith.subf %1, %6 : vector<16x128xf32>
    %8 = arith.mulf %7, %7 : vector<16x128xf32>
    %cst_3 = arith.constant dense<0.000000e+00> : vector<16xf32>
    %9 = vector.multi_reduction <add>, %8, %cst_3 [1] : vector<16x128xf32> to vector<16xf32>
    %10 = vector.shape_cast %9 : vector<16xf32> to vector<16x1xf32>
    %cst_4 = arith.constant 1.280000e+02 : f32
    %11 = vector.broadcast %cst_4 : f32 to vector<16x1xf32>
    %12 = arith.divf %10, %11 : vector<16x1xf32>
    %13 = vector.broadcast %5 : vector<16x1xf32> to vector<16x128xf32>
    %14 = arith.subf %1, %13 : vector<16x128xf32>
    %cst_5 = arith.constant 9.99999996E-13 : f32
    %15 = vector.broadcast %cst_5 : f32 to vector<16x1xf32>
    %16 = arith.addf %12, %15 : vector<16x1xf32>
    %17 = math.rsqrt %16 : vector<16x1xf32>
    %18 = vector.broadcast %17 : vector<16x1xf32> to vector<16x128xf32>
    %19 = arith.mulf %14, %18 : vector<16x128xf32>
    %c0_6 = arith.constant 0 : index
    %c0_7 = arith.constant 0 : index
    %20 = vector.load %arg5[%c0_6, %c0_7] : memref<1x128xf32, #tpu.memory_space<vmem>>, vector<1x128xf32>
    %21 = vector.shape_cast %20 : vector<1x128xf32> to vector<128xf32>
    %22 = vector.shape_cast %21 : vector<128xf32> to vector<1x128xf32>
    %23 = vector.broadcast %22 : vector<1x128xf32> to vector<16x128xf32>
    %24 = arith.mulf %19, %23 : vector<16x128xf32>
    %c0_8 = arith.constant 0 : index
    %c0_9 = arith.constant 0 : index
    %25 = vector.load %arg6[%c0_8, %c0_9] : memref<1x128xf32, #tpu.memory_space<vmem>>, vector<1x128xf32>
    %26 = vector.shape_cast %25 : vector<1x128xf32> to vector<128xf32>
    %27 = vector.shape_cast %26 : vector<128xf32> to vector<1x128xf32>
    %28 = vector.broadcast %27 : vector<1x128xf32> to vector<16x128xf32>
    %29 = arith.addf %24, %28 : vector<16x128xf32>
    %c0_10 = arith.constant 0 : index
    %c0_11 = arith.constant 0 : index
    %c0_12 = arith.constant 0 : index
    %30 = vector.load %arg7[%c0_10, %c0_11, %c0_12] : memref<1x16x128xf32, #tpu.memory_space<vmem>>, vector<1x16x128xf32>
    %31 = vector.shape_cast %30 : vector<1x16x128xf32> to vector<16x128xf32>
    %32 = vector.shape_cast %29 : vector<16x128xf32> to vector<1x16x128xf32>
    tpu.vector_store %arg7[%c0_10, %c0_11, %c0_12], %32 {strides = array<i32>} : memref<1x16x128xf32, #tpu.memory_space<vmem>>, vector<1x16x128xf32>,
    %c0_13 = arith.constant 0 : index
    %c0_14 = arith.constant 0 : index
    %33 = vector.load %arg3[%c0_13, %c0_14] : memref<128x384xf32, #tpu.memory_space<vmem>>, vector<128x384xf32>
    %cst_15 = arith.constant dense<0.000000e+00> : vector<16x384xf32>
    %34 = tpu.matmul %29, %33, %cst_15 {dimension_numbers = #tpu.dot_dimension_numbers<[1], [0], [0], [1], [0, 0, 1, 1], [], []>} : vector<16x128xf32>, vector<128x384xf32>, vector<16x384xf32> -> vector<16x384xf32>
    %c0_16 = arith.constant 0 : index
    %c0_17 = arith.constant 0 : index
    %35 = vector.load %arg4[%c0_16, %c0_17] : memref<1x384xf32, #tpu.memory_space<vmem>>, vector<1x384xf32>
    %36 = vector.shape_cast %35 : vector<1x384xf32> to vector<384xf32>
    %37 = vector.shape_cast %36 : vector<384xf32> to vector<1x384xf32>
    %38 = vector.broadcast %37 : vector<1x384xf32> to vector<16x384xf32>
    %39 = arith.addf %34, %38 : vector<16x384xf32>
    %40 = vector.shape_cast %39 : vector<16x384xf32> to vector<16x12x32xf32>
    %41 = tpu.transpose %40, [1, 0, 2] : vector<16x12x32xf32> -> vector<12x16x32xf32>
    %c0_18 = arith.constant 0 : index
    %c0_19 = arith.constant 0 : index
    %c0_20 = arith.constant 0 : index
    %c0_21 = arith.constant 0 : index
    %42 = vector.load %arg8[%c0_18, %c0_19, %c0_20, %c0_21] : memref<1x12x16x32xf32, #tpu.memory_space<vmem>>, vector<1x12x16x32xf32>
    %43 = vector.shape_cast %42 : vector<1x12x16x32xf32> to vector<12x16x32xf32>
    %44 = vector.shape_cast %41 : vector<12x16x32xf32> to vector<1x12x16x32xf32>
    tpu.vector_store %arg8[%c0_18, %c0_19, %c0_20, %c0_21], %44 {strides = array<i32>} : memref<1x12x16x32xf32, #tpu.memory_space<vmem>>, vector<1x12x16x32xf32>,
    return
  }
  func.func @transform_0(%arg0: i32, %arg1: i32) -> (i32, i32, i32) {
    %c0_i32 = arith.constant 0 : i32
    %c0_i32_0 = arith.constant 0 : i32
    return %arg0, %arg1, %c0_i32 : i32, i32, i32
  }
  func.func @transform_1(%arg0: i32, %arg1: i32) -> (i32, i32) {
    %c0_i32 = arith.constant 0 : i32
    %c0_i32_0 = arith.constant 0 : i32
    %c0_i32_1 = arith.constant 0 : i32
    return %c0_i32, %c0_i32_0 : i32, i32
  }
  func.func @transform_2(%arg0: i32, %arg1: i32) -> (i32, i32) {
    %c0_i32 = arith.constant 0 : i32
    %c0_i32_0 = arith.constant 0 : i32
    %c0_i32_1 = arith.constant 0 : i32
    return %c0_i32, %c0_i32_0 : i32, i32
  }
  func.func @transform_3(%arg0: i32, %arg1: i32) -> (i32, i32) {
    %c0_i32 = arith.constant 0 : i32
    %c0_i32_0 = arith.constant 0 : i32
    %c0_i32_1 = arith.constant 0 : i32
    return %c0_i32, %c0_i32_0 : i32, i32
  }
  func.func @transform_4(%arg0: i32, %arg1: i32) -> (i32, i32) {
    %c0_i32 = arith.constant 0 : i32
    %c0_i32_0 = arith.constant 0 : i32
    %c0_i32_1 = arith.constant 0 : i32
    return %c0_i32, %c0_i32_0 : i32, i32
  }
  func.func @transform_5(%arg0: i32, %arg1: i32) -> (i32, i32, i32) {
    %c0_i32 = arith.constant 0 : i32
    %c0_i32_0 = arith.constant 0 : i32
    return %arg0, %arg1, %c0_i32 : i32, i32, i32
  }
  func.func @transform_6(%arg0: i32, %arg1: i32) -> (i32, i32, i32, i32) {
    %c0_i32 = arith.constant 0 : i32
    %c0_i32_0 = arith.constant 0 : i32
    %c0_i32_1 = arith.constant 0 : i32
    return %arg0, %c0_i32, %arg1, %c0_i32_0 : i32, i32, i32, i32
  }
}

</mosaic_0001>

<bundles_post_ra>
// kernel: tpu_custom_call.1
= control target key start
LH: loop header
LB: loop body
LE: loop exit
PB: predicated region body
PF: predicated region fallthrough
CT: control target
= control target key end

     0   :  { %s2728_s0 = inlined_call_operand.hbm [shape: f32[2,32,128], index: 0, kind: input, shape index: {}]   ;;  %s2729_s1 = inlined_call_operand.hbm [shape: f32[128,384], index: 1, kind: input, shape index: {}]   ;;  %s2730_s2 = inlined_call_operand.vmem [shape: f32[1,384], index: 2, kind: input, shape index: {}]   ;;  %s2731_s3 = inlined_call_operand.vmem [shape: f32[1,128], index: 3, kind: input, shape index: {}]   ;;  %s2732_s4 = inlined_call_operand.vmem [shape: f32[1,128], index: 4, kind: input, shape index: {}]   ;;  %s2733_s5 = inlined_call_operand.hbm [shape: f32[2,32,128], index: 5, kind: output, shape index: {0}]   ;;  %s2734_s6 = inlined_call_operand.hbm [shape: f32[2,12,32,32], index: 6, kind: output, shape index: {1}]  }
   0x1   :  { %2745 = sst [smem:[#allocation21_spill]] %s2729_s1 }
   0x2   :  { %2746 = sst [smem:[#allocation22_spill]] %s2733_s5 }
   0x3   :  { %2747 = sst [smem:[#allocation23_spill]] %s2734_s6 }
   0x4   :  { %12 = vsyncpa [#allocation3], 0 }
   0x5   :  { %14 = vsyncpa [#allocation3 + $0x1], 0 }
   0x6   :  { %15 = vsyncpa [#allocation6], 0 }
   0x7   :  { %16 = vsyncpa [#allocation4], 0 }
   0x8   :  { %18 = vsyncpa [#allocation4 + $0x1], 0 }
   0x9   :  { %19 = vsyncpa [#allocation9], 0 }
   0xa   :  { %21 = vsyncpa [#allocation9 + $0x1], 0  ;;  %s2193_s21 = smov 0   ;;  %s2195_s22 = smov 0  }
   0xb   :  { %s2197_s23 = smov 0   ;;  %s2199_s24 = smov 0  }
   0xc   :  { %s2201_s25 = smov 0   ;;  %s2203_s26 = smov 0  }
   0xd   :  { %s2205_s27 = smov 0   ;;  %s2207_s28 = smov 0  }
   0xe LB: > { %2748 = sst [smem:[#allocation16_spill]] %s2106_s21  ;;  %s1685_s29 = sadd.s32 4294967295, %s2134_s28   ;;  %s2134_s28 = sphi %s2207_s28, %s27_s28   ;;  %s2130_s27 = sphi %s2205_s27, %s2779_s27   ;;  %s2126_s26 = sphi %s2203_s26, %s2773_s26   ;;  %s2122_s25 = sphi %s2201_s25, %s2778_s25   ;;  %s2118_s24 = sphi %s2199_s24, %s2772_s24   ;;  %s2114_s23 = sphi %s2197_s23, %s2777_s23   ;;  %s2110_s22 = sphi %s2195_s22, %s2776_s22   ;;  %s2106_s21 = sphi %s2193_s21, %s2775_s21  }
   0xf   : > { %2749 = sst [smem:[#allocation17_spill]] %s2126_s26  ;;  %s1686_s30 = sadd.s32 4294967294, %s2134_s28  }
  0x10   : > { %p61_p0 = scmp.ne.s32.totalorder %s2110_s22, %s2106_s21  ;;  %p2237_p1 = scmp.eq.s32.totalorder %s1685_s29, 0 }
  0x11   : > { %p2241_p2 = scmp.eq.s32.totalorder %s1685_s29, 3  ;;  %p177_p3 = scmp.eq.s32.totalorder %s1686_s30, 3 }
  0x12   : > { %s2750_s7 = scalar_select %p2237_p1, 1, 0 }
  0x13   : > { %s2751_s8 = scalar_select %p2241_p2, 1, 0 }
  0x14   : > { %p2247_p4 = por %p2237_p1, %p61_p0  ;;  %p1687_p5 = scmp.ge.s32.totalorder %s2134_s28, 1 }
  0x15   : > { %p2252_p6 = por %p177_p3, %p61_p0  ;;  %p212_p7 = scmp.lt.s32.totalorder %s2134_s28, 5 }
  0x16   : > { %s2752_s9 = scalar_select %p2247_p4, 1, 0 }
  0x17   : > { %s2753_s10 = scalar_select %p2252_p6, 1, 0 }
  0x18   : > { %p2257_p8 = pnand %p1687_p5, %p212_p7  ;;  %s2136_s12 = smov [#allocation5]  }
  0x19   : > { %2754 = sst [smem:[#allocation18_spill]] %s2753_s10  ;;  %s224_s13 = sshll.u32 %s2136_s12, 4  ;;  %s225_s13 = int_to_ptr.vmem [resolvable:$true] %s224_s13 }
  0x1a   : > { %s2755_s11 = scalar_select %p2257_p8, 1, 0 }
  0x1b   : > { %p1863_p9 = pneg %p2257_p8  ;;  %s2757_s1 = sld [smem:[#allocation21_spill]] }
  0x1d   : > { %p2265_p10 = pnand %p1863_p9, %p2237_p1 }
  0x1f   : > { %p1972_p12 = pneg %p2265_p10 }
  0x21   : > { %s1970_s17 = scalar_lea.hbm %s2757_s1, 6144 }
  0x22   : > { %p1971_p11 = scmp.ne.s32.totalorder %s2757_s1, %s1970_s17  ;;  %p1977_p3 = scmp.lt.u32.totalorder %s1970_s17, %s2757_s1 }
  0x24   : > { %p1973_p13 = pnand %p1972_p12, %p1971_p11 }
  0x26   : > { %p1974_p0 = pneg %p1973_p13 }
  0x28   : > { %p1979_p5 = pnand %p1977_p3, %p1974_p0 }
  0x2a   : > { %1982 = shalt.err (!%p1979_p5)
}
  0x2b   : > { %s1983_s30 = scalar_lea.vmem %s225_s13, 6144  ;;  %p1991_p1 = scmp.lt.s32.totalorder %s225_s13, %s225_s13 }
  0x2c   : > { %p1984_p7 = scmp.ne.s32.totalorder %s225_s13, %s1983_s30  ;;  %p1992_p4 = scmp.lt.s32.totalorder %s1983_s30, %s1983_s30 }
  0x2e   : > { %p1986_p9 = pnand %p1984_p7, %p1972_p12  ;;  %p1993_p8 = por %p1992_p4, %p1991_p1 }
  0x30   : > { %p1987_p6 = pneg %p1986_p9 }
  0x32   : > { %p1994_p2 = pnand %p1993_p8, %p1987_p6 }
  0x34   : > { %1997 = shalt.err (!%p1994_p2)
}
  0x35   : > { %s2137_s12 = smov 384   ;;  %s2138_s15 = smov 24  }
  0x36   : > { %1866 = dma.hbm_to_vmem [thread:$0]  (!%p2265_p10), %s2757_s1, 6144, %s225_s13, [#allocation6], %s2137_s12, %s2137_s12, %s2138_s15  }
  0x37   : > { %s36_s18 = sadd.s32 1, %s2126_s26  ;;  %s39_s19 = sadd.s32 1, %s2130_s27 }
  0x38   : > { %p37_p1 = scmp.ge.s32.totalorder %s36_s18, 2  ;;  %s48_s20 = sadd.s32 1, %s2114_s23 }
  0x39   : > { %p55_p2 = scmp.ne.s32.totalorder %s2114_s23, %s2110_s22  ;;  %p56_p4 = scmp.eq.s32.totalorder %s2134_s28, 0 }
  0x3a   : > { %s2781_s18 = smov (%p37_p1, %s36_s18), 0  ;;  %s2783_s19 = smov (!%p37_p1, %s39_s19), %s2130_s27 }
  0x3b   : > { %2758 = sst [smem:[#allocation19_spill]] %s2781_s18  ;;  %s44_s29 = ssub.s32 %s2126_s26, %s2781_s18 }
  0x3c   : > { %p41_p6 = scmp.ge.s32.totalorder %s2783_s19, 2  ;;  %p2759_p8 = scmp.ne.s32.totalorder %s2751_s8, 0 }
  0x3d   : > { %p2302_p10 = por %p56_p4, %p55_p2  ;;  %p1879_p12 = scmp.lt.s32.totalorder %s2134_s28, 4 }
  0x3e   : > { %p2298_p11 = por %p2759_p8, %p55_p2  ;;  %s2785_s19 = smov (%p41_p6, %s2783_s19), 0 }
  0x3f   : > { %2762 = sst [smem:[#allocation20_spill]] %s2785_s19  ;;  %s247_s30 = sand.u32 1, %s2114_s23  }
  0x40   : > { %s1691_s12 = sshll.u32 %s2126_s26, 1  ;;  %s43_s15 = ssub.s32 %s2130_s27, %s2785_s19 }
  0x41   : > { %s45_s16 = sor.u32 %s44_s29, %s43_s15  ;;  %s1690_s17 = sshll.u32 %s247_s30, 4 }
  0x42   : > { %p46_p13 = scmp.eq.s32.totalorder %s45_s16, 0  ;;  %s1692_s8 = sshll.u32 %s2130_s27, 2 }
  0x43   : > { %s251_s1 = scalar_lea.vmem [#allocation2], %s1690_s17  ;;  %s257_s21 = sadd.s32 %s1692_s8, %s1691_s12 }
  0x44   : > { %s260_s18 = sshll.u32 %s251_s1, 4  ;;  %s1693_s6 = sshll.u32 %s257_s21, 7  ;;  %s2317_s18 = int_to_ptr.vmem [resolvable:$true] %s260_s18 }
  0x45   : > { %s2315_s10 = scalar_select %p46_p13, %s2114_s23, %s48_s20  }
  0x46   : > { %p2323_p0 = pnand %p1879_p12, %p2302_p10  ;;  %s2330_s29 = scalar_lea.hbm %s2728_s0, %s1693_s6 }
  0x47   : > { %s2332_s1 = scalar_lea.sflag [#allocation3], %s247_s30  ;;  %s1998_s21 = scalar_lea.hbm %s2330_s29, 256 }
  0x48   : > { %p1999_p3 = scmp.ne.s32.totalorder %s2330_s29, %s1998_s21  ;;  %p2000_p5 = pneg %p2323_p0 }
  0x49   : > { %s2003_s19 = scalar_lea.hbm %s2728_s0, 1024  ;;  %p2004_p1 = scmp.lt.u32.totalorder %s2330_s29, %s2728_s0 }
  0x4a   : > { %p2001_p7 = pnand %p2000_p5, %p1999_p3  ;;  %p2005_p2 = scmp.lt.u32.totalorder %s2003_s19, %s1998_s21 }
  0x4b   : > { %p2007_p6 = scmp.lt.u32.totalorder %s1998_s21, %s2330_s29 }
  0x4c   : > { %p2002_p9 = pneg %p2001_p7  ;;  %p2006_p4 = por %p2005_p2, %p2004_p1 }
  0x4e   : > { %p2008_p8 = por %p2007_p6, %p2006_p4 }
  0x50   : > { %p2009_p10 = pnand %p2008_p8, %p2002_p9 }
  0x52   : > { %2012 = shalt.err (!%p2009_p10)
}
  0x53   : > { %s2013_s30 = scalar_lea.vmem %s2317_s18, 256  ;;  %s2139_s12 = smov [#allocation2]  }
  0x54   : > { %p2014_p12 = scmp.ne.s32.totalorder %s2317_s18, %s2013_s30  ;;  %s2018_s15 = sshll.u32 %s2139_s12, 4  ;;  %s2019_s15 = int_to_ptr.vmem [resolvable:$false] %s2018_s15 }
  0x55   : > { %s2020_s16 = scalar_lea.vmem %s2019_s15, 512  ;;  %p2021_p7 = scmp.lt.s32.totalorder %s2317_s18, %s2019_s15 }
  0x56   : > { %p2016_p13 = pnand %p2014_p12, %p2000_p5  ;;  %p2022_p1 = scmp.lt.s32.totalorder %s2020_s16, %s2013_s30 }
  0x58   : > { %p2017_p3 = pneg %p2016_p13  ;;  %p2023_p2 = por %p2022_p1, %p2021_p7 }
  0x5a   : > { %p2024_p4 = pnand %p2023_p2, %p2017_p3 }
  0x5c   : > { %2027 = shalt.err (!%p2024_p4)
}
  0x5d   : > { %s2140_s17 = smov 128   ;;  %s2141_s8 = smov 8  }
  0x5e   : > { %1870 = dma.hbm_to_vmem [thread:$0]  (!%p2323_p0), %s2330_s29, 256, %s2317_s18, %s2332_s1, %s2140_s17, %s2140_s17, %s2141_s8  }
  0x5f   : > { %p2764_p5 = scmp.ne.s32.totalorder %s2755_s11, 0 }
  0x60   : > { %s2363_s21 = sand.u32 (!%p2764_p5), 1, %s2110_s22   ;;  %p2765_p9 = scmp.ne.s32.totalorder (!%p2764_p5), %s2752_s9, 0 }
  0x61   : > { %272 = sbr.rel (%p2764_p5) target bundleno = 833 (0x341), region = 40  ;;  %s1695_s20 = sshll.u32 (!%p2764_p5), %s2363_s21, 4 }
  0x62   : > { %s275_s26 = scalar_lea.sflag (!%p2764_p5), [#allocation3], %s2363_s21  ;;  %s278_s19 = scalar_lea.vmem (!%p2764_p5), [#allocation2], %s1695_s20 }
  0x68   : > { %2089 = dma.done.wait (%p2765_p9), %s275_s26, 256  }
  0x69   : > { %2091 = vsyncadd (%p2765_p9), %s275_s26, 4294967040  ;;  %p2766_p0 = scmp.ne.s32.totalorder %s2750_s7, 0 }
  0x6b   : > { %2093 = dma.done.wait (%p2766_p0), [#allocation6], 6144  }
  0x6c   : > { %2095 = vsyncadd (%p2766_p0), [#allocation6], 4294961152  ;;  %v319_v0 = vld [vmem:[%s278_s19] sm:$0xff]  ;;  %v320_v1 = vld [vmem:[%s278_s19 + $0x8] sm:$0xff]  ;;  %s2395_s18 = scalar_lea.vmem [#allocation7], %s1695_s20  ;;  %s2143_s6 = smov 96  }
  0x6d   : > { %321 = vadd.xlane.f32.xlu0 %v319_v0  ;;  %v365_v2 = vld [vmem:[#allocation5 + $0x8] sm:$0xff]  ;;  %v368_v3 = vld [vmem:[#allocation5 + $0x20] sm:$0xff]  ;;  %v367_v6 = vld [vmem:[#allocation5 + $0x18] sm:$0xff]  ;;  %s2144_s13 = smov 64   ;;  %s2145_s30 = smov 32  }
  0x6e   : > { %v364_v4 = vld [vmem:[#allocation5] sm:$0xff]  ;;  %v1781_v5 = vpack.c.bf16 %v368_v3, %v365_v2  ;;  %v371_v7 = vld [vmem:[#allocation5 + $0x38] sm:$0xff]  ;;  %v374_v8 = vld [vmem:[#allocation5 + $0x50] sm:$0xff]  ;;  %s1503_s12 = sshll.u32 %s2395_s18, 4  ;;  %s1721_s15 = sshll.u32 %s2118_s24, 1  ;;  %s2442_s12 = int_to_ptr.vmem [resolvable:$true] %s1503_s12 }
  0x6f   : > { %v1783_v9 = vpack.c.bf16 %v367_v6, %v364_v4  ;;  %v1785_v10 = vpack.c.bf16 %v374_v8, %v371_v7  ;;  %v366_v11 = vld [vmem:[#allocation5 + $0x10] sm:$0xff]  ;;  %v369_v12 = vld [vmem:[#allocation5 + $0x28] sm:$0xff]  ;;  %v380_v17 = vld [vmem:[#allocation5 + $0x80] sm:$0xff]  ;;  %v2142_v4 = vmov 0.0   ;;  %s1722_s16 = sshll.u32 %s2122_s25, 2  ;;  %s2767_s19 = sld [smem:[#allocation22_spill]] }
  0x70   : > { %v370_v13 = vld [vmem:[#allocation5 + $0x30] sm:$0xff]  ;;  %1782 = vmatprep.subr.bf16.mxu0 %v1781_v5  ;;  %v1813_v14 = vpack.c.bf16 %v369_v12, %v366_v11  ;;  %v373_v15 = vld [vmem:[#allocation5 + $0x48] sm:$0xff]  ;;  %v372_v19 = vld [vmem:[#allocation5 + $0x40] sm:$0xff]  ;;  %493 = vmatprep.mubr.f32.mxu0 %v2142_v4  ;;  %s1500_s17 = sadd.s32 %s1722_s16, %s1721_s15  ;;  %s1483_s7 = scalar_lea.sflag [#allocation4], %s2363_s21 }
  0x71   : > { %323 = vadd.xlane.f32.xlu0 %v320_v1  ;;  %v377_v16 = vld [vmem:[#allocation5 + $0x68] sm:$0xff]  ;;  %1784 = vmatpush1.bf16.msra.mxu0 %v1783_v9  ;;  %v1787_v18 = vpack.c.bf16 %v373_v15, %v370_v13  ;;  %v375_v20 = vld [vmem:[#allocation5 + $0x58] sm:$0xff]  ;;  %v376_v23 = vld [vmem:[#allocation5 + $0x60] sm:$0xff]  ;;  %s1723_s8 = sshll.u32 %s1500_s17, 7  ;;  %s2028_s9 = scalar_lea.vmem %s2442_s12, 256 }
  0x72   : > { %1786 = vmatprep.subr.bf16.mxu0 %v1785_v10  ;;  %1814 = vmatprep.subr.bf16.mxu1 %v1813_v14  ;;  %v1789_v21 = vpack.c.bf16 %v380_v17, %v377_v16  ;;  %v1817_v22 = vpack.c.bf16 %v375_v20, %v372_v19  ;;  %v379_v24 = vld [vmem:[#allocation5 + $0x78] sm:$0xff]  ;;  %v386_v35 = vld [vmem:[#allocation5 + $0xb0] sm:$0xff]  ;;  %v381_v38 = vld [vmem:[#allocation5 + $0x88] sm:$0xff]  ;;  %p2029_p6 = scmp.ne.s32.totalorder %s2442_s12, %s2028_s9  ;;  %s2146_s11 = smov [#allocation7]  }
  0x73   : > { %1816 = vmatpush3.bf16.msra.mxu1 %v1813_v14  ;;  %v1791_v25 = vpack.c.bf16 %v379_v24, %v376_v23  ;;  %v383_v34 = vld [vmem:[#allocation5 + $0x98] sm:$0xff]  ;;  %v378_v36 = vld [vmem:[#allocation5 + $0x70] sm:$0xff]  ;;  %v385_v40 = vld [vmem:[#allocation5 + $0xa8] sm:$0xff] }
  0x74   : > { %1818 = vmatprep.subr.bf16.mxu1 %v1817_v22  ;;  %v1793_v37 = vpack.c.bf16 %v386_v35, %v383_v34  ;;  %v382_v39 = vld [vmem:[#allocation5 + $0x90] sm:$0xff]  ;;  %v1821_v41 = vpack.c.bf16 %v381_v38, %v378_v36  ;;  %v389_v43 = vld [vmem:[#allocation5 + $0xc8] sm:$0xff]  ;;  %v392_v44 = vld [vmem:[#allocation5 + $0xe0] sm:$0xff]  ;;  %v414_v36 = vlaneseq  ;;  %p2030_p8 = pnand %p2029_p6, %p2298_p11 }
  0x75   : > { %1788 = vmatpush1.bf16.msra.mxu0 %v1787_v18  ;;  %v1795_v42 = vpack.c.bf16 %v385_v40, %v382_v39  ;;  %v384_v45 = vld [vmem:[#allocation5 + $0xa0] sm:$0xff]  ;;  %v1797_v46 = vpack.c.bf16 %v392_v44, %v389_v43  ;;  %v387_v47 = vld [vmem:[#allocation5 + $0xb8] sm:$0xff]  ;;  %v398_v53 = vld [vmem:[#allocation5 + $0x110] sm:$0xff]  ;;  %s2447_s5 = scalar_lea.hbm %s2767_s19, %s1723_s8 }
  0x76   : > { %1790 = vmatprep.subr.bf16.mxu0 %v1789_v21  ;;  %v388_v48 = vld [vmem:[#allocation5 + $0xc0] sm:$0xff]  ;;  %v391_v49 = vld [vmem:[#allocation5 + $0xd8] sm:$0xff]  ;;  %v1825_v50 = vpack.c.bf16 %v387_v47, %v384_v45  ;;  %v390_v54 = vld [vmem:[#allocation5 + $0xd0] sm:$0xff]  ;;  %p2031_p10 = pneg %p2030_p8 }
  0x77   : > { %1820 = vmatpush3.bf16.msra.mxu1 %v1817_v22  ;;  %v1799_v51 = vpack.c.bf16 %v391_v49, %v388_v48  ;;  %v395_v52 = vld [vmem:[#allocation5 + $0xf8] sm:$0xff]  ;;  %v393_v56 = vld [vmem:[#allocation5 + $0xe8] sm:$0xff]  ;;  %v394_v57 = vld [vmem:[#allocation5 + $0xf0] sm:$0xff] }
  0x78   : > { %1822 = vmatprep.subr.bf16.mxu1 %v1821_v41  ;;  %v1801_v55 = vpack.c.bf16 %v398_v53, %v395_v52  ;;  %v397_v58 = vld [vmem:[#allocation5 + $0x108] sm:$0xff]  ;;  %v1829_v59 = vpack.c.bf16 %v393_v56, %v390_v54  ;;  %v404_v62 = vld [vmem:[#allocation5 + $0x140] sm:$0xff]  ;;  %v403_v3 = vld [vmem:[#allocation5 + $0x138] sm:$0xff] }
  0x79   : > { %1792 = vmatpush1.bf16.msra.mxu0 %v1791_v25  ;;  %v1803_v60 = vpack.c.bf16 %v397_v58, %v394_v57  ;;  %v401_v61 = vld [vmem:[#allocation5 + $0x128] sm:$0xff]  ;;  %v396_v63 = vld [vmem:[#allocation5 + $0x100] sm:$0xff]  ;;  %v407_v7 = vld [vmem:[#allocation5 + $0x158] sm:$0xff] }
  0x7a   : > { %1794 = vmatprep.subr.bf16.mxu0 %v1793_v37  ;;  %v400_v2 = vld [vmem:[#allocation5 + $0x120] sm:$0xff]  ;;  %v410_v8 = vld [vmem:[#allocation5 + $0x170] sm:$0xff]  ;;  %v405_v11 = vld [vmem:[#allocation5 + $0x148] sm:$0xff]  ;;  %v2399_v37 = vshrl.u32 %v414_v36, 7 }
  0x7b   : > { %1824 = vmatpush3.bf16.msra.mxu1 %v1821_v41  ;;  %v1807_v6 = vpack.c.bf16 %v403_v3, %v400_v2  ;;  %v402_v9 = vld [vmem:[#allocation5 + $0x130] sm:$0xff]  ;;  %v1809_v10 = vpack.c.bf16 %v410_v8, %v407_v7  ;;  %v409_v13 = vld [vmem:[#allocation5 + $0x168] sm:$0xff]  ;;  %v408_v16 = vld [vmem:[#allocation5 + $0x160] sm:$0xff] }
  0x7c   : > { %1826 = vmatprep.subr.bf16.mxu1 %v1825_v50  ;;  %v406_v12 = vld [vmem:[#allocation5 + $0x150] sm:$0xff]  ;;  %v1837_v14 = vpack.c.bf16 %v405_v11, %v402_v9  ;;  %v411_v17 = vld [vmem:[#allocation5 + $0x178] sm:$0xff]  ;;  %v416_v38 = vsub.s32 0, %v2399_v37  ;;  %v424_v40 = vsub.s32 2, %v2399_v37  ;;  %v420_v43 = vsub.s32 1, %v2399_v37 }
  0x7d   : > { %1796 = vmatpush1.bf16.msra.mxu0 %v1795_v42  ;;  %v1811_v15 = vpack.c.bf16 %v409_v13, %v406_v12  ;;  %v1841_v18 = vpack.c.bf16 %v411_v17, %v408_v16 }
  0x7e   : > { %1798 = vmatprep.subr.bf16.mxu0 %v1797_v46 }
  0x7f   : > { %1828 = vmatpush3.bf16.msra.mxu1 %v1825_v50 }
  0x80   : > { %1830 = vmatprep.subr.bf16.mxu1 %v1829_v59 }
  0x81   : > { %1800 = vmatpush1.bf16.msra.mxu0 %v1799_v51 }
  0x82   : > { %1802 = vmatprep.subr.bf16.mxu0 %v1801_v55 }
  0x83   : > { %1832 = vmatpush3.bf16.msra.mxu1 %v1829_v59 }
  0x85   : > { %1804 = vmatpush1.bf16.msra.mxu0 %v1803_v60 }
  0xfa   : > { %v322_v26 = vpop.xlane.xlu0 %321 }
  0xfb   : > { %v326_v27 = vmul.f32 0.0078125, %v322_v26  ;;  %v1698_v26 = vld [vmem:[%s2731_s3] ss:$0 sm:$0xff] }
  0xfd   : > { %v2377_v28 = vsub.f32 %v319_v0, %v326_v27  ;;  %v1805_v0 = vpack.c.bf16 %v404_v62, %v401_v61 }
  0xfe   : > { %v324_v29 = vpop.xlane.xlu0 %323 }
  0xff   : > { %v327_v30 = vmul.f32 0.0078125, %v324_v29  ;;  %v330_v31 = vmul.f32 %v2377_v28, %v2377_v28  ;;  %1806 = vmatprep.subr.bf16.mxu0 %v1805_v0  ;;  %v1699_v29 = vld [vmem:[%s2732_s4] ss:$0 sm:$0xff] }
 0x100   : > { %1808 = vmatpush1.bf16.msra.mxu0 %v1807_v6 }
 0x101   : > { %v2381_v32 = vsub.f32 %v320_v1, %v327_v30  ;;  %332 = vadd.xlane.f32.xlu1 %v330_v31  ;;  %v399_v1 = vld [vmem:[#allocation5 + $0x118] sm:$0xff]  ;;  %1810 = vmatprep.subr.bf16.mxu0 %v1809_v10 }
 0x102   : > { %v1833_v5 = vpack.c.bf16 %v399_v1, %v396_v63 }
 0x103   : > { %v331_v33 = vmul.f32 %v2381_v32, %v2381_v32 }
 0x104   : > { %1834 = vmatprep.subr.bf16.mxu1 %v1833_v5  ;;  %1812 = vmatpush1.bf16.msra.mxu0 %v1811_v15 }
 0x105   : > { %334 = vadd.xlane.f32.xlu1 %v331_v33  ;;  %1836 = vmatpush3.bf16.msra.mxu1 %v1833_v5 }
 0x106   : > { %1838 = vmatprep.subr.bf16.mxu1 %v1837_v14 }
 0x109   : > { %1840 = vmatpush3.bf16.msra.mxu1 %v1837_v14 }
 0x10a   : > { %1842 = vmatprep.subr.bf16.mxu1 %v1841_v18 }
 0x10d   : > { %1844 = vmatpush3.bf16.msra.mxu1 %v1841_v18 }
 0x18e   : > { %v333_v19 = vpop.xlane.xlu1 %332 }
 0x18f   : > { %v336_v20 = vmul.f32 0.0078125, %v333_v19 }
 0x191   : > { %v338_v21 = vadd.f32 1e-12, %v336_v20 }
 0x192   : > { %v335_v22 = vpop.xlane.xlu1 %334 }
 0x193   : > { %1966 = vrsqrt.f32 %v338_v21  ;;  %v337_v23 = vmul.f32 0.0078125, %v335_v22 }
 0x195   : > { %v339_v24 = vadd.f32 1e-12, %v337_v23 }
 0x197   : > { %1968 = vrsqrt.f32 %v339_v24 }
 0x19d   : > { %v1967_v25 = vpop.eup %1966 }
 0x19e   : > { %v342_v27 = vmul.f32 %v1967_v25, %v2377_v28 }
 0x1a0   : > { %v351_v30 = vmul.f32 %v1698_v26, %v342_v27 }
 0x1a1   : > { %v1969_v31 = vpop.eup %1968 }
 0x1a2   : > { %v360_v33 = vadd.f32 %v1699_v29, %v351_v30  ;;  %v343_v34 = vmul.f32 %v1969_v31, %v2381_v32  ;;  %v412_v32 = vld [vmem:[%s2730_s2] sm:$0x7] }
 0x1a3   : > { %v417_v39 = vrot.slane %v412_v32, %v416_v38  ;;  %v425_v45 = vrot.slane %v412_v32, %v424_v40  ;;  %v421_v48 = vrot.slane %v412_v32, %v420_v43 }
 0x1a4   : > { %362 = vst [vmem:[%s2395_s18] sm:$0xff] %v360_v33  ;;  %494 = vmatmul.mubr.f32.vlgmr.msra.gmra.mrb[0].mxu0 %v360_v33  ;;  %1778 = vmatprep.mubr.f32.mxu1 %v360_v33  ;;  %v352_v35 = vmul.f32 %v1698_v26, %v343_v34 }
 0x1a5   : > { %499 = vmatprep.mubr.f32.mxu0 %v2142_v4 }
 0x1a6   : > { %v361_v28 = vadd.f32 %v1699_v29, %v352_v35 }
 0x1a8   : > { %363 = vst [vmem:[%s2395_s18 + $0x8] sm:$0xff] %v361_v28  ;;  %500 = vmatmul.mubr.f32.gmra.mrb[2].mxu0 %v361_v28  ;;  %1779 = vmatmul.mubr.f32.vlgmr.msra.gmra.mrb[0].mxu1 %v361_v28  ;;  %s2032_s18 = sshll.u32 %s2146_s11, 4  ;;  %s2033_s18 = int_to_ptr.vmem [resolvable:$false] %s2032_s18 }
 0x1a9   : > { %s2034_s29 = scalar_lea.vmem %s2033_s18, 512  ;;  %p2035_p12 = scmp.lt.s32.totalorder %s2442_s12, %s2033_s18 }
 0x1aa   : > { %p2036_p13 = scmp.lt.s32.totalorder %s2034_s29, %s2028_s9 }
 0x1ac   : > { %p2037_p3 = por %p2036_p13, %p2035_p12 }
 0x1ae   : > { %p2038_p7 = pnand %p2037_p3, %p2031_p10 }
 0x277   : > { %v495_v41 = vpop.f32.mrb[0].mxu0 }
 0x278   : > { %v2406_v42 = vadd.f32 %v495_v41, %v417_v39  ;;  %v497_v44 = vpop.f32.mrb[1].mxu0 }
 0x279   : > { %v2415_v52 = vadd.f32 %v497_v44, %v421_v48 }
 0x27a   : > { %583 = vrot.lane.b32.xlu0 %v2406_v42, %s2143_s6  ;;  %589 = vrot.lane.b32.xlu1 %v2406_v42, %s2144_s13 }
 0x27b   : > { %v501_v46 = vpop.f32.mrb[2].mxu0  ;;  %v1780_v47 = vpop.f32.mrb[0].mxu1 }
 0x27c   : > { %v2411_v49 = vadd.f32 %v1780_v47, %v425_v45  ;;  %v503_v50 = vpop.f32.mrb[3].mxu0  ;;  %v572_v51 = vpop.f32.mrb[1].mxu1  ;;  %v2419_v53 = vadd.f32 %v501_v46, %v417_v39 }
 0x27d   : > { %v2425_v54 = vadd.f32 %v572_v51, %v425_v45  ;;  %v2429_v55 = vadd.f32 %v503_v50, %v421_v48 }
 0x27e   : > { %595 = vrot.lane.b32.xlu0 %v2406_v42, %s2145_s30  ;;  %625 = vrot.lane.b32.xlu1 %v2411_v49, %s2143_s6 }
 0x282   : > { %603 = vrot.lane.b32.xlu0 %v2415_v52, %s2143_s6  ;;  %631 = vrot.lane.b32.xlu1 %v2411_v49, %s2144_s13 }
 0x286   : > { %609 = vrot.lane.b32.xlu0 %v2415_v52, %s2144_s13  ;;  %585 = vrot.lane.b32.xlu1 %v2419_v53, %s2143_s6 }
 0x28a   : > { %615 = vrot.lane.b32.xlu0 %v2415_v52, %s2145_s30  ;;  %591 = vrot.lane.b32.xlu1 %v2419_v53, %s2144_s13 }
 0x28e   : > { %623 = vrot.lane.b32.xlu0 %v2425_v54, %s2143_s6  ;;  %597 = vrot.lane.b32.xlu1 %v2419_v53, %s2145_s30 }
 0x292   : > { %629 = vrot.lane.b32.xlu0 %v2425_v54, %s2144_s13  ;;  %605 = vrot.lane.b32.xlu1 %v2429_v55, %s2143_s6 }
 0x296   : > { %635 = vrot.lane.b32.xlu0 %v2425_v54, %s2145_s30  ;;  %611 = vrot.lane.b32.xlu1 %v2429_v55, %s2144_s13 }
 0x29a   : > { %617 = vrot.lane.b32.xlu1 %v2429_v55, %s2145_s30 }
 0x29e   : > { %637 = vrot.lane.b32.xlu1 %v2411_v49, %s2145_s30 }
 0x29f   : > { %2041 = shalt.err (!%p2038_p7)
}
 0x2a0   : > { %s2042_s1 = scalar_lea.hbm %s2447_s5, 256  ;;  %s2046_s30 = scalar_lea.hbm %s2767_s19, 1024 }
 0x2a1   : > { %p2043_p1 = scmp.ne.s32.totalorder %s2447_s5, %s2042_s1  ;;  %p2047_p5 = scmp.lt.u32.totalorder %s2447_s5, %s2767_s19 }
 0x2a2   : > { %p2048_p9 = scmp.lt.u32.totalorder %s2046_s30, %s2042_s1  ;;  %p2050_p6 = scmp.lt.u32.totalorder %s2042_s1, %s2447_s5 }
 0x2a3   : > { %p2044_p2 = pnand %p2043_p1, %p2298_p11 }
 0x2a4   : > { %p2049_p0 = por %p2048_p9, %p2047_p5 }
 0x2a5   : > { %p2045_p4 = pneg %p2044_p2 }
 0x2a6   : > { %p2051_p8 = por %p2050_p6, %p2049_p0 }
 0x2a8   : > { %p2052_p10 = pnand %p2051_p8, %p2045_p4 }
 0x2aa   : > { %2055 = shalt.err (!%p2052_p10)
}
 0x2ab   : > { %s2147_s8 = smov 128   ;;  %s2148_s20 = smov 8   ;;  %v2149_v56 = vmov 1983009808   ;;  %v2150_v58 = vmov 1934713408  }
 0x2ac   : > { %1853 = dma.vmem_to_hbm [thread:$0]  (%p2298_p11), %s2442_s12, 256, %s2447_s5, %s1483_s7, %s2147_s8, %s2147_s8, %s2148_s20   ;;  %v644_v57 = vunpack.c.l.s4 %v2149_v56  ;;  %v708_v59 = vunpack.c.l.s4 %v2150_v58  ;;  %vm1457_vm0 = vcmask 261120  }
 0x2ad   : > { %s1845_s12 = smul.u32 192, %s2363_s21  ;;  %s1488_s5 = scalar_lea.sflag [#allocation9], %s2363_s21 }
 0x2ae   : > { %v645_v60 = vunpack.c.0.s8 %v644_v57  ;;  %v709_v63 = vunpack.c.0.s8 %v708_v59 }
 0x2af   : > { %s2518_s26 = scalar_lea.vmem [#allocation8], %s1845_s12 }
 0x2b0   : > { %v2474_v0 = vsub.s32 %v645_v60, %v2399_v37  ;;  %v2481_v7 = vsub.s32 %v709_v63, %v2399_v37 }
 0x2ec   : > { %v590_v61 = vpop.permute.xlu1 %589  ;;  %v584_v62 = vpop.permute.xlu0 %583 }
 0x2ed   : > { %v641_v1 = vcombine.low %v2406_v42, %v590_v61  ;;  %v642_v2 = vcombine.high %v2406_v42, %v590_v61 }
 0x2ef   : > { %v649_v8 = vrot.slane %v641_v1, %v2474_v0  ;;  %v656_v9 = vrot.slane %v642_v2, %v2474_v0 }
 0x2f0   : > { %v2478_v3 = vpop.permute.xlu1 %625  ;;  %v596_v4 = vpop.permute.xlu0 %595 }
 0x2f1   : > { %v657_v5 = vcombine.low %v584_v62, %v596_v4  ;;  %v658_v6 = vcombine.high %v584_v62, %v596_v4 }
 0x2f3   : > { %v665_v10 = vrot.slane %v657_v5, %v2474_v0  ;;  %v672_v11 = vrot.slane %v658_v6, %v2474_v0 }
 0x2f4   : > { %v2487_v12 = vpop.permute.xlu1 %631  ;;  %v604_v13 = vpop.permute.xlu0 %603 }
 0x2f5   : > { %v705_v14 = vcombine.low %v649_v8, %v665_v10  ;;  %v706_v15 = vcombine.high %v649_v8, %v665_v10  ;;  %v721_v16 = vcombine.low %v656_v9, %v672_v11  ;;  %v722_v17 = vcombine.high %v656_v9, %v672_v11 }
 0x2f6   : > { %v981_v34 = vcombine.low %v2411_v49, %v2487_v12  ;;  %v982_v35 = vcombine.high %v2411_v49, %v2487_v12 }
 0x2f7   : > { %v713_v18 = vrot.slane %v705_v14, %v2481_v7  ;;  %v720_v19 = vrot.slane %v706_v15, %v2481_v7  ;;  %v729_v20 = vrot.slane %v721_v16, %v2481_v7  ;;  %v736_v21 = vrot.slane %v722_v17, %v2481_v7 }
 0x2f8   : > { %v586_v22 = vpop.permute.xlu1 %585  ;;  %v610_v23 = vpop.permute.xlu0 %609 }
 0x2f9   : > { %v1700_v24 = vcombine.low %v713_v18, %v720_v19  ;;  %v1702_v25 = vcombine.high %v713_v18, %v720_v19  ;;  %v1704_v26 = vcombine.low %v729_v20, %v736_v21  ;;  %v1706_v27 = vcombine.high %v729_v20, %v736_v21 }
 0x2fa   : > { %v673_v28 = vcombine.low %v2415_v52, %v610_v23  ;;  %v674_v36 = vcombine.high %v2415_v52, %v610_v23 }
 0x2fb   : > { %v1057_v29 = vrot.slane %v1700_v24, %v2474_v0  ;;  %v1073_v30 = vrot.slane %v1702_v25, %v2474_v0  ;;  %v1089_v31 = vrot.slane %v1704_v26, %v2474_v0  ;;  %v1105_v33 = vrot.slane %v1706_v27, %v2474_v0 }
 0x2fc   : > { %v592_v37 = vpop.permute.xlu1 %591  ;;  %v616_v38 = vpop.permute.xlu0 %615  ;;  %v681_v51 = vrot.slane %v673_v28, %v2474_v0  ;;  %v688_v52 = vrot.slane %v674_v36, %v2474_v0 }
 0x2fd   : > { %v1113_v32 = vcombine.low %v1057_v29, %v1073_v30  ;;  %v1114_v39 = vcombine.high %v1057_v29, %v1073_v30  ;;  %v1145_v40 = vcombine.low %v1089_v31, %v1105_v33  ;;  %v1146_v41 = vcombine.high %v1089_v31, %v1105_v33 }
 0x2fe   : > { %v845_v42 = vcombine.low %v2419_v53, %v592_v37  ;;  %v846_v43 = vcombine.high %v2419_v53, %v592_v37  ;;  %v689_v44 = vcombine.low %v604_v13, %v616_v38  ;;  %v690_v45 = vcombine.high %v604_v13, %v616_v38 }
 0x2ff   : > { %v1121_v46 = vrot.slane %v1113_v32, %v2481_v7  ;;  %v1128_v47 = vrot.slane %v1114_v39, %v2481_v7  ;;  %v1153_v48 = vrot.slane %v1145_v40, %v2481_v7  ;;  %v1160_v50 = vrot.slane %v1146_v41, %v2481_v7 }
 0x300   : > { %v697_v56 = vrot.slane %v689_v44, %v2474_v0  ;;  %v704_v57 = vrot.slane %v690_v45, %v2474_v0  ;;  %v598_v53 = vpop.permute.xlu1 %597  ;;  %v2514_v58 = vpop.permute.xlu0 %623  ;;  %v853_v5 = vrot.slane %v845_v42, %v2474_v0  ;;  %v860_v6 = vrot.slane %v846_v43, %v2474_v0 }
 0x301   : > { %v1177_v59 = vcombine.low %v1121_v46, %v1153_v48  ;;  %v1178_v60 = vcombine.high %v1121_v46, %v1153_v48  ;;  %v1179_v61 = vcombine.low %v1128_v47, %v1160_v50  ;;  %v1180_v62 = vcombine.high %v1128_v47, %v1160_v50 }
 0x302   : > { %v737_v63 = vcombine.low %v681_v51, %v697_v56  ;;  %v738_v1 = vcombine.high %v681_v51, %v697_v56  ;;  %v753_v2 = vcombine.low %v688_v52, %v704_v57  ;;  %v754_v4 = vcombine.high %v688_v52, %v704_v57 }
 0x303   : > { %1458 = vst.msk [vmem:[%s2518_s26] sm:$0xff] %vm1457_vm0, %v1177_v59  ;;  %1460 = vst.msk [vmem:[%s2518_s26 + $0x10] sm:$0xff] %vm1457_vm0, %v1178_v60  ;;  %v861_v8 = vcombine.low %v586_v22, %v598_v53  ;;  %v862_v9 = vcombine.high %v586_v22, %v598_v53 }
 0x304   : > { %1462 = vst.msk [vmem:[%s2518_s26 + $0x20] sm:$0xff] %vm1457_vm0, %v1179_v61  ;;  %1464 = vst.msk [vmem:[%s2518_s26 + $0x30] sm:$0xff] %vm1457_vm0, %v1180_v62  ;;  %v745_v10 = vrot.slane %v737_v63, %v2481_v7  ;;  %v752_v11 = vrot.slane %v738_v1, %v2481_v7  ;;  %v761_v13 = vrot.slane %v753_v2, %v2481_v7  ;;  %v2534_v15 = vpop.permute.xlu1 %605  ;;  %v630_v16 = vpop.permute.xlu0 %629 }
 0x305   : > { %v768_v14 = vrot.slane %v754_v4, %v2481_v7  ;;  %v869_v17 = vrot.slane %v861_v8, %v2474_v0  ;;  %v876_v18 = vrot.slane %v862_v9, %v2474_v0  ;;  %v777_v19 = vcombine.low %v2425_v54, %v630_v16 }
 0x306   : > { %v778_v20 = vcombine.high %v2425_v54, %v630_v16  ;;  %v1701_v21 = vcombine.low %v745_v10, %v752_v11  ;;  %v1703_v22 = vcombine.high %v745_v10, %v752_v11  ;;  %v2560_v8 = vrot.slane %v981_v34, %v2474_v0 }
 0x307   : > { %v1705_v23 = vcombine.low %v761_v13, %v768_v14  ;;  %v1707_v24 = vcombine.high %v761_v13, %v768_v14  ;;  %v909_v25 = vcombine.low %v853_v5, %v869_v17  ;;  %v910_v26 = vcombine.high %v853_v5, %v869_v17 }
 0x308   : > { %v925_v27 = vcombine.low %v860_v6, %v876_v18  ;;  %v926_v29 = vcombine.high %v860_v6, %v876_v18  ;;  %v1064_v30 = vrot.slane %v1701_v21, %v2474_v0  ;;  %v1080_v31 = vrot.slane %v1703_v22, %v2474_v0  ;;  %v612_v36 = vpop.permute.xlu1 %611  ;;  %v636_v6 = vpop.permute.xlu0 %635 }
 0x309   : > { %v1096_v33 = vrot.slane %v1705_v23, %v2474_v0  ;;  %v1112_v28 = vrot.slane %v1707_v24, %v2474_v0  ;;  %v917_v37 = vrot.slane %v909_v25, %v2481_v7  ;;  %v924_v54 = vrot.slane %v910_v26, %v2481_v7 }
 0x30a   : > { %v933_v38 = vrot.slane %v925_v27, %v2481_v7  ;;  %v940_v32 = vrot.slane %v926_v29, %v2481_v7  ;;  %v1129_v39 = vcombine.low %v1064_v30, %v1080_v31  ;;  %v1130_v40 = vcombine.high %v1064_v30, %v1080_v31 }
 0x30b   : > { %v1161_v41 = vcombine.low %v1096_v33, %v1112_v28  ;;  %v1162_v42 = vcombine.high %v1096_v33, %v1112_v28  ;;  %v1708_v43 = vcombine.low %v917_v37, %v924_v54  ;;  %v1710_v44 = vcombine.high %v917_v37, %v924_v54 }
 0x30c   : > { %v1712_v45 = vcombine.low %v933_v38, %v940_v32  ;;  %v1714_v46 = vcombine.high %v933_v38, %v940_v32  ;;  %v1137_v47 = vrot.slane %v1129_v39, %v2481_v7  ;;  %v1144_v48 = vrot.slane %v1130_v40, %v2481_v7  ;;  %v618_v52 = vpop.permute.xlu1 %617 }
 0x30d   : > { %v1169_v50 = vrot.slane %v1161_v41, %v2481_v7  ;;  %v1176_v51 = vrot.slane %v1162_v42, %v2481_v7  ;;  %v1193_v56 = vrot.slane %v1708_v43, %v2474_v0  ;;  %v1209_v57 = vrot.slane %v1710_v44, %v2474_v0 }
 0x30e   : > { %v1225_v53 = vrot.slane %v1712_v45, %v2474_v0  ;;  %v1241_v59 = vrot.slane %v1714_v46, %v2474_v0  ;;  %v2566_v9 = vrot.slane %v982_v35, %v2474_v0  ;;  %v877_v10 = vcombine.low %v2429_v55, %v612_v36 }
 0x30f   : > { %v1181_v60 = vcombine.low %v1137_v47, %v1169_v50  ;;  %v1182_v61 = vcombine.high %v1137_v47, %v1169_v50  ;;  %v1183_v62 = vcombine.low %v1144_v48, %v1176_v51  ;;  %v1184_v63 = vcombine.high %v1144_v48, %v1176_v51 }
 0x310   : > { %v1249_v1 = vcombine.low %v1193_v56, %v1209_v57  ;;  %v1250_v2 = vcombine.high %v1193_v56, %v1209_v57  ;;  %v1281_v4 = vcombine.low %v1225_v53, %v1241_v59  ;;  %v1282_v5 = vcombine.high %v1225_v53, %v1241_v59  ;;  %v638_v17 = vpop.permute.xlu1 %637 }
 0x311   : > { %1466 = vst.msk [vmem:[%s2518_s26 + $0x40] sm:$0xff] %vm1457_vm0, %v1181_v60  ;;  %1468 = vst.msk [vmem:[%s2518_s26 + $0x50] sm:$0xff] %vm1457_vm0, %v1182_v61  ;;  %v878_v11 = vcombine.high %v2429_v55, %v612_v36  ;;  %v785_v35 = vrot.slane %v777_v19, %v2474_v0  ;;  %v792_v14 = vrot.slane %v778_v20, %v2474_v0 }
 0x312   : > { %1470 = vst.msk [vmem:[%s2518_s26 + $0x60] sm:$0xff] %vm1457_vm0, %v1183_v62  ;;  %1472 = vst.msk [vmem:[%s2518_s26 + $0x70] sm:$0xff] %vm1457_vm0, %v1184_v63  ;;  %v1257_v34 = vrot.slane %v1249_v1, %v2481_v7  ;;  %v1264_v13 = vrot.slane %v1250_v2, %v2481_v7  ;;  %v1289_v49 = vrot.slane %v1281_v4, %v2481_v7 }
 0x313   : > { %v1296_v12 = vrot.slane %v1282_v5, %v2481_v7  ;;  %v793_v16 = vcombine.low %v2514_v58, %v636_v6  ;;  %v794_v55 = vcombine.high %v2514_v58, %v636_v6  ;;  %v893_v26 = vcombine.low %v2534_v15, %v618_v52 }
 0x314   : > { %v1313_v18 = vcombine.low %v1257_v34, %v1289_v49  ;;  %v1314_v21 = vcombine.high %v1257_v34, %v1289_v49  ;;  %v894_v19 = vcombine.high %v2534_v15, %v618_v52  ;;  %v885_v58 = vrot.slane %v877_v10, %v2474_v0 }
 0x315   : > { %v1315_v22 = vcombine.low %v1264_v13, %v1296_v12  ;;  %v1316_v23 = vcombine.high %v1264_v13, %v1296_v12  ;;  %v801_v24 = vrot.slane %v793_v16, %v2474_v0  ;;  %v808_v25 = vrot.slane %v794_v55, %v2474_v0 }
 0x316   : > { %1459 = vst.msk [vmem:[%s2518_s26 + $0x8] sm:$0xff] %vm1457_vm0, %v1313_v18  ;;  %1461 = vst.msk [vmem:[%s2518_s26 + $0x18] sm:$0xff] %vm1457_vm0, %v1314_v21  ;;  %v892_v20 = vrot.slane %v878_v11, %v2474_v0  ;;  %v997_v27 = vcombine.low %v2478_v3, %v638_v17  ;;  %v998_v29 = vcombine.high %v2478_v3, %v638_v17 }
 0x317   : > { %1463 = vst.msk [vmem:[%s2518_s26 + $0x28] sm:$0xff] %vm1457_vm0, %v1315_v22  ;;  %1465 = vst.msk [vmem:[%s2518_s26 + $0x38] sm:$0xff] %vm1457_vm0, %v1316_v23  ;;  %v809_v30 = vcombine.low %v785_v35, %v801_v24  ;;  %v810_v31 = vcombine.high %v785_v35, %v801_v24  ;;  %v825_v33 = vcombine.low %v792_v14, %v808_v25 }
 0x318   : > { %v826_v15 = vcombine.high %v792_v14, %v808_v25  ;;  %v901_v28 = vrot.slane %v893_v26, %v2474_v0  ;;  %v908_v36 = vrot.slane %v894_v19, %v2474_v0  ;;  %v2605_v37 = vrot.slane %v997_v27, %v2474_v0 }
 0x319   : > { %v2608_v54 = vrot.slane %v998_v29, %v2474_v0  ;;  %v817_v38 = vrot.slane %v809_v30, %v2481_v7  ;;  %v824_v32 = vrot.slane %v810_v31, %v2481_v7  ;;  %v833_v3 = vrot.slane %v825_v33, %v2481_v7 }
 0x31a   : > { %v840_v39 = vrot.slane %v826_v15, %v2481_v7  ;;  %v941_v40 = vcombine.low %v885_v58, %v901_v28  ;;  %v942_v41 = vcombine.high %v885_v58, %v901_v28  ;;  %v957_v42 = vcombine.low %v892_v20, %v908_v36 }
 0x31b   : > { %v958_v43 = vcombine.high %v892_v20, %v908_v36  ;;  %v1321_v44 = vcombine.low %v817_v38, %v824_v32  ;;  %v1716_v45 = vcombine.high %v817_v38, %v824_v32  ;;  %v1013_v58 = vcombine.low %v2560_v8, %v2605_v37 }
 0x31c   : > { %v1337_v46 = vcombine.low %v833_v3, %v840_v39  ;;  %v1717_v47 = vcombine.high %v833_v3, %v840_v39  ;;  %v949_v48 = vrot.slane %v941_v40, %v2481_v7  ;;  %v956_v50 = vrot.slane %v942_v41, %v2481_v7 }
 0x31d   : > { %v965_v51 = vrot.slane %v957_v42, %v2481_v7  ;;  %v972_v52 = vrot.slane %v958_v43, %v2481_v7  ;;  %v1328_v56 = vrot.slane %v1321_v44, %v2474_v0  ;;  %v1336_v57 = vrot.slane %v1716_v45, %v2474_v0 }
 0x31e   : > { %v1344_v53 = vrot.slane %v1337_v46, %v2474_v0  ;;  %v1352_v59 = vrot.slane %v1717_v47, %v2474_v0  ;;  %v1709_v60 = vcombine.low %v949_v48, %v956_v50  ;;  %v1711_v61 = vcombine.high %v949_v48, %v956_v50 }
 0x31f   : > { %v1713_v62 = vcombine.low %v965_v51, %v972_v52  ;;  %v1715_v63 = vcombine.high %v965_v51, %v972_v52  ;;  %v1353_v1 = vcombine.low %v1328_v56, %v1336_v57  ;;  %v1354_v2 = vcombine.high %v1328_v56, %v1336_v57 }
 0x320   : > { %v1369_v4 = vcombine.low %v1344_v53, %v1352_v59  ;;  %v1370_v5 = vcombine.high %v1344_v53, %v1352_v59  ;;  %v1200_v6 = vrot.slane %v1709_v60, %v2474_v0  ;;  %v1216_v10 = vrot.slane %v1711_v61, %v2474_v0 }
 0x321   : > { %v1232_v11 = vrot.slane %v1713_v62, %v2474_v0  ;;  %v1248_v34 = vrot.slane %v1715_v63, %v2474_v0  ;;  %v1361_v13 = vrot.slane %v1353_v1, %v2481_v7  ;;  %v1368_v49 = vrot.slane %v1354_v2, %v2481_v7 }
 0x322   : > { %v1377_v12 = vrot.slane %v1369_v4, %v2481_v7  ;;  %v1384_v35 = vrot.slane %v1370_v5, %v2481_v7  ;;  %v1265_v14 = vcombine.low %v1200_v6, %v1216_v10  ;;  %v1266_v16 = vcombine.high %v1200_v6, %v1216_v10 }
 0x323   : > { %v1297_v55 = vcombine.low %v1232_v11, %v1248_v34  ;;  %v1298_v17 = vcombine.high %v1232_v11, %v1248_v34  ;;  %v1014_v20 = vcombine.high %v2560_v8, %v2605_v37  ;;  %v1029_v27 = vcombine.low %v2566_v9, %v2608_v54 }
 0x324   : > { %v1385_v18 = vcombine.low %v1361_v13, %v1377_v12  ;;  %v1386_v21 = vcombine.high %v1361_v13, %v1377_v12  ;;  %v1387_v22 = vcombine.low %v1368_v49, %v1384_v35  ;;  %v1388_v23 = vcombine.high %v1368_v49, %v1384_v35 }
 0x325   : > { %v1273_v24 = vrot.slane %v1265_v14, %v2481_v7  ;;  %v1280_v25 = vrot.slane %v1266_v16, %v2481_v7  ;;  %v1305_v26 = vrot.slane %v1297_v55, %v2481_v7  ;;  %v1312_v19 = vrot.slane %v1298_v17, %v2481_v7 }
 0x326   : > { %1474 = vst.msk [vmem:[%s2518_s26 + $0x80] sm:$0xff] %vm1457_vm0, %v1385_v18  ;;  %1476 = vst.msk [vmem:[%s2518_s26 + $0x90] sm:$0xff] %vm1457_vm0, %v1386_v21  ;;  %v1030_v29 = vcombine.high %v2566_v9, %v2608_v54  ;;  %v1021_v28 = vrot.slane %v1013_v58, %v2481_v7  ;;  %v1028_v36 = vrot.slane %v1014_v20, %v2481_v7 }
 0x327   : > { %1478 = vst.msk [vmem:[%s2518_s26 + $0xa0] sm:$0xff] %vm1457_vm0, %v1387_v22  ;;  %1480 = vst.msk [vmem:[%s2518_s26 + $0xb0] sm:$0xff] %vm1457_vm0, %v1388_v23  ;;  %v1317_v30 = vcombine.low %v1273_v24, %v1305_v26  ;;  %v1318_v31 = vcombine.high %v1273_v24, %v1305_v26  ;;  %v1319_v33 = vcombine.low %v1280_v25, %v1312_v19 }
 0x328   : > { %v1320_v15 = vcombine.high %v1280_v25, %v1312_v19  ;;  %v1037_v38 = vrot.slane %v1029_v27, %v2481_v7  ;;  %v1044_v32 = vrot.slane %v1030_v29, %v2481_v7  ;;  %v1389_v8 = vcombine.low %v1021_v28, %v1028_v36 }
 0x329   : > { %1467 = vst.msk [vmem:[%s2518_s26 + $0x48] sm:$0xff] %vm1457_vm0, %v1317_v30  ;;  %1469 = vst.msk [vmem:[%s2518_s26 + $0x58] sm:$0xff] %vm1457_vm0, %v1318_v31  ;;  %v1718_v9 = vcombine.high %v1021_v28, %v1028_v36 }
 0x32a   : > { %1471 = vst.msk [vmem:[%s2518_s26 + $0x68] sm:$0xff] %vm1457_vm0, %v1319_v33  ;;  %1473 = vst.msk [vmem:[%s2518_s26 + $0x78] sm:$0xff] %vm1457_vm0, %v1320_v15  ;;  %v1405_v37 = vcombine.low %v1037_v38, %v1044_v32  ;;  %v1719_v54 = vcombine.high %v1037_v38, %v1044_v32  ;;  %v1396_v3 = vrot.slane %v1389_v8, %v2474_v0 }
 0x32b   : > { %v1404_v39 = vrot.slane %v1718_v9, %v2474_v0 }
 0x32c   : > { %v1412_v40 = vrot.slane %v1405_v37, %v2474_v0  ;;  %v1420_v41 = vrot.slane %v1719_v54, %v2474_v0 }
 0x32d   : > { %v1421_v42 = vcombine.low %v1396_v3, %v1404_v39  ;;  %v1422_v43 = vcombine.high %v1396_v3, %v1404_v39 }
 0x32e   : > { %v1437_v44 = vcombine.low %v1412_v40, %v1420_v41  ;;  %v1438_v45 = vcombine.high %v1412_v40, %v1420_v41 }
 0x32f   : > { %v1429_v46 = vrot.slane %v1421_v42, %v2481_v7  ;;  %v1436_v47 = vrot.slane %v1422_v43, %v2481_v7 }
 0x330   : > { %v1445_v48 = vrot.slane %v1437_v44, %v2481_v7  ;;  %v1452_v50 = vrot.slane %v1438_v45, %v2481_v7 }
 0x332   : > { %v1453_v51 = vcombine.low %v1429_v46, %v1445_v48  ;;  %v1454_v52 = vcombine.high %v1429_v46, %v1445_v48  ;;  %v1455_v56 = vcombine.low %v1436_v47, %v1452_v50  ;;  %v1456_v57 = vcombine.high %v1436_v47, %v1452_v50 }
 0x334   : > { %1475 = vst.msk [vmem:[%s2518_s26 + $0x88] sm:$0xff] %vm1457_vm0, %v1453_v51  ;;  %1477 = vst.msk [vmem:[%s2518_s26 + $0x98] sm:$0xff] %vm1457_vm0, %v1454_v52 }
 0x335   : > { %1479 = vst.msk [vmem:[%s2518_s26 + $0xa8] sm:$0xff] %vm1457_vm0, %v1455_v56  ;;  %1481 = vst.msk [vmem:[%s2518_s26 + $0xb8] sm:$0xff] %vm1457_vm0, %v1456_v57 }
 0x336   : > { %s1846_s7 = smul.u32 48, %s2122_s25  ;;  %s1537_s9 = sshll.u32 %s2518_s26, 4  ;;  %s1538_s9 = int_to_ptr.vmem [resolvable:$true] %s1537_s9 }
 0x337   : > { %s2151_s18 = smov 256   ;;  %s2768_s6 = sld [smem:[#allocation23_spill]] }
 0x338   : > { %s1518_s11 = sadd.s32 %s1846_s7, %s1721_s15  ;;  %1854 = sst [smem:[#allocation11]] (%p2298_p11), %s2151_s18 }
 0x339   : > { %s1725_s29 = sshll.u32 %s1518_s11, 7  ;;  %s2152_s30 = smov 512  }
 0x33a   : > { %1855 = sst [smem:[#allocation11 + $0x1]] (%p2298_p11), %s2152_s30  ;;  %s2153_s16 = smov 2  }
 0x33b   : > { %1856 = sst [smem:[#allocation11 + $0x2]] (%p2298_p11), %s2153_s16  ;;  %s2154_s25 = smov 128  }
 0x33c   : > { %1857 = sst [smem:[#allocation11 + $0x3]] (%p2298_p11), %s2154_s25  ;;  %s2155_s24 = smov 8  }
 0x33d   : > { %s1520_s13 = scalar_lea.hbm %s2768_s6, %s1725_s29  ;;  %1858 = sst [smem:[#allocation11 + $0x4]] (%p2298_p11), %s2154_s25 }
 0x33e   : > { %1859 = sst [smem:[#allocation11 + $0x5]] (%p2298_p11), %s2155_s24  ;;  %s2156_s15 = smov [#allocation10]  }
 0x33f   : > { %s2157_s17 = smov 0  }
 0x340   : > { %1860 = dma.general (%p2298_p11), %s1538_s9, 3072, %s1520_s13, %s1488_s5, %s2156_s15, [#allocation11], %s2157_s17, 0  }
 0x341 PF: > { %s2769_s8 = sld [smem:[#allocation16_spill]]  ;;  %s2770_s20 = sld [smem:[#allocation18_spill]] }
 0x342   : > { %p1881_p12 = scmp.ge.s32.totalorder %s2134_s28, 2 }
 0x347   : > { %s1565_s12 = sand.u32 1, %s2769_s8   ;;  %p2771_p13 = scmp.ne.s32.totalorder %s2770_s20, 0 }
 0x348   : > { %s1566_s26 = scalar_lea.sflag [#allocation4], %s1565_s12 }
 0x349   : > { %p1872_p3 = pnand %p1881_p12, %p2771_p13 }
 0x34b   : > { %2097 = dma.done.wait (!%p1872_p3), %s1566_s26, 256  }
 0x34c   : > { %2099 = vsyncadd (!%p1872_p3), %s1566_s26, 4294967040  ;;  %s1575_s7 = scalar_lea.sflag [#allocation9], %s1565_s12 }
 0x34d   : > { %2101 = dma.done.wait (!%p1872_p3), %s1575_s7, 3072  }
 0x34e   : > { %2103 = vsyncadd (!%p1872_p3), %s1575_s7, 4294964224  ;;  %s27_s28 = sadd.s32 1, %s2134_s28   ;;  %s2772_s24 = sld [smem:[#allocation17_spill]] }
 0x34f   : > { %p24_p7 = scmp.ge.s32.totalorder %s27_s28, 6   ;;  %s2773_s26 = sld [smem:[#allocation19_spill]] }
 0x350   : > { %s2774_s14 = sld [smem:[#allocation20_spill]]  ;;  %s2775_s21 = smov %s2110_s22 }
 0x351   : > { %s2776_s22 = smov %s2114_s23  ;;  %s2777_s23 = smov %s2315_s10 }
 0x352   : > { %s2778_s25 = smov %s2130_s27  ;;  %26 = sbr.rel (!%p24_p7) target bundleno = 14 (0xe), region = 111 }
 0x356   : > { %s2779_s27 = smov %s2774_s14 }
 0x359   :  { %1580 = vsyncpa [#allocation3], 1 }
 0x35a   :  { %1582 = vsyncpa [#allocation3 + $0x1], 1 }
 0x35b   :  { %1583 = vsyncpa [#allocation6], 1 }
 0x35c   :  { %1584 = vsyncpa [#allocation4], 1 }
 0x35d   :  { %1586 = vsyncpa [#allocation4 + $0x1], 1 }
 0x35e   :  { %1587 = vsyncpa [#allocation9], 1 }
 0x35f   :  { %1589 = vsyncpa [#allocation9 + $0x1], 1 }

// kernel: tpu_custom_call.1
= control target key start
LH: loop header
LB: loop body
LE: loop exit
PB: predicated region body
PF: predicated region fallthrough
CT: control target
= control target key end

     0   :  { %s2728_s0 = inlined_call_operand.hbm [shape: f32[2,32,128], index: 0, kind: input, shape index: {}]   ;;  %s2729_s1 = inlined_call_operand.hbm [shape: f32[128,384], index: 1, kind: input, shape index: {}]   ;;  %s2730_s2 = inlined_call_operand.vmem [shape: f32[1,384], index: 2, kind: input, shape index: {}]   ;;  %s2731_s3 = inlined_call_operand.vmem [shape: f32[1,128], index: 3, kind: input, shape index: {}]   ;;  %s2732_s4 = inlined_call_operand.vmem [shape: f32[1,128], index: 4, kind: input, shape index: {}]   ;;  %s2733_s5 = inlined_call_operand.hbm [shape: f32[2,32,128], index: 5, kind: output, shape index: {0}]   ;;  %s2734_s6 = inlined_call_operand.hbm [shape: f32[2,12,32,32], index: 6, kind: output, shape index: {1}]  }
   0x1   :  { %2745 = sst [smem:[#allocation21_spill]] %s2729_s1 }
   0x2   :  { %2746 = sst [smem:[#allocation22_spill]] %s2733_s5 }
   0x3   :  { %2747 = sst [smem:[#allocation23_spill]] %s2734_s6 }
   0x4   :  { %12 = vsyncpa [#allocation3], 0 }
   0x5   :  { %14 = vsyncpa [#allocation3 + $0x1], 0 }
   0x6   :  { %15 = vsyncpa [#allocation6], 0 }
   0x7   :  { %16 = vsyncpa [#allocation4], 0 }
   0x8   :  { %18 = vsyncpa [#allocation4 + $0x1], 0 }
   0x9   :  { %19 = vsyncpa [#allocation9], 0 }
   0xa   :  { %21 = vsyncpa [#allocation9 + $0x1], 0  ;;  %s2193_s21 = smov 0   ;;  %s2195_s22 = smov 0  }
   0xb   :  { %s2197_s23 = smov 0   ;;  %s2199_s24 = smov 0  }
   0xc   :  { %s2201_s25 = smov 0   ;;  %s2203_s26 = smov 0  }
   0xd   :  { %s2205_s27 = smov 0   ;;  %s2207_s28 = smov 0  }
   0xe LB: > { %2748 = sst [smem:[#allocation16_spill]] %s2106_s21  ;;  %s1685_s29 = sadd.s32 4294967295, %s2134_s28   ;;  %s2134_s28 = sphi %s2207_s28, %s27_s28   ;;  %s2130_s27 = sphi %s2205_s27, %s2779_s27   ;;  %s2126_s26 = sphi %s2203_s26, %s2773_s26   ;;  %s2122_s25 = sphi %s2201_s25, %s2778_s25   ;;  %s2118_s24 = sphi %s2199_s24, %s2772_s24   ;;  %s2114_s23 = sphi %s2197_s23, %s2777_s23   ;;  %s2110_s22 = sphi %s2195_s22, %s2776_s22   ;;  %s2106_s21 = sphi %s2193_s21, %s2775_s21  }
   0xf   : > { %2749 = sst [smem:[#allocation17_spill]] %s2126_s26  ;;  %s1686_s30 = sadd.s32 4294967294, %s2134_s28  }
  0x10   : > { %p61_p0 = scmp.ne.s32.totalorder %s2110_s22, %s2106_s21  ;;  %p2237_p1 = scmp.eq.s32.totalorder %s1685_s29, 0 }
  0x11   : > { %p2241_p2 = scmp.eq.s32.totalorder %s1685_s29, 3  ;;  %p177_p3 = scmp.eq.s32.totalorder %s1686_s30, 3 }
  0x12   : > { %s2750_s7 = scalar_select %p2237_p1, 1, 0 }
  0x13   : > { %s2751_s8 = scalar_select %p2241_p2, 1, 0 }
  0x14   : > { %p2247_p4 = por %p2237_p1, %p61_p0  ;;  %p1687_p5 = scmp.ge.s32.totalorder %s2134_s28, 1 }
  0x15   : > { %p2252_p6 = por %p177_p3, %p61_p0  ;;  %p212_p7 = scmp.lt.s32.totalorder %s2134_s28, 5 }
  0x16   : > { %s2752_s9 = scalar_select %p2247_p4, 1, 0 }
  0x17   : > { %s2753_s10 = scalar_select %p2252_p6, 1, 0 }
  0x18   : > { %p2257_p8 = pnand %p1687_p5, %p212_p7  ;;  %s2136_s12 = smov [#allocation5]  }
  0x19   : > { %2754 = sst [smem:[#allocation18_spill]] %s2753_s10  ;;  %s224_s13 = sshll.u32 %s2136_s12, 4  ;;  %s225_s13 = int_to_ptr.vmem [resolvable:$true] %s224_s13 }
  0x1a   : > { %s2755_s11 = scalar_select %p2257_p8, 1, 0 }
  0x1b   : > { %p1863_p9 = pneg %p2257_p8  ;;  %s2757_s1 = sld [smem:[#allocation21_spill]] }
  0x1d   : > { %p2265_p10 = pnand %p1863_p9, %p2237_p1 }
  0x1f   : > { %p1972_p12 = pneg %p2265_p10 }
  0x21   : > { %s1970_s17 = scalar_lea.hbm %s2757_s1, 6144 }
  0x22   : > { %p1971_p11 = scmp.ne.s32.totalorder %s2757_s1, %s1970_s17  ;;  %p1977_p3 = scmp.lt.u32.totalorder %s1970_s17, %s2757_s1 }
  0x24   : > { %p1973_p13 = pnand %p1972_p12, %p1971_p11 }
  0x26   : > { %p1974_p0 = pneg %p1973_p13 }
  0x28   : > { %p1979_p5 = pnand %p1977_p3, %p1974_p0 }
  0x2a   : > { %1982 = shalt.err (!%p1979_p5)
}
  0x2b   : > { %s1983_s30 = scalar_lea.vmem %s225_s13, 6144  ;;  %p1991_p1 = scmp.lt.s32.totalorder %s225_s13, %s225_s13 }
  0x2c   : > { %p1984_p7 = scmp.ne.s32.totalorder %s225_s13, %s1983_s30  ;;  %p1992_p4 = scmp.lt.s32.totalorder %s1983_s30, %s1983_s30 }
  0x2e   : > { %p1986_p9 = pnand %p1984_p7, %p1972_p12  ;;  %p1993_p8 = por %p1992_p4, %p1991_p1 }
  0x30   : > { %p1987_p6 = pneg %p1986_p9 }
  0x32   : > { %p1994_p2 = pnand %p1993_p8, %p1987_p6 }
  0x34   : > { %1997 = shalt.err (!%p1994_p2)
}
  0x35   : > { %s2137_s12 = smov 384   ;;  %s2138_s15 = smov 24  }
  0x36   : > { %1866 = dma.hbm_to_vmem [thread:$0]  (!%p2265_p10), %s2757_s1, 6144, %s225_s13, [#allocation6], %s2137_s12, %s2137_s12, %s2138_s15  }
  0x37   : > { %s36_s18 = sadd.s32 1, %s2126_s26  ;;  %s39_s19 = sadd.s32 1, %s2130_s27 }
  0x38   : > { %p37_p1 = scmp.ge.s32.totalorder %s36_s18, 2  ;;  %s48_s20 = sadd.s32 1, %s2114_s23 }
  0x39   : > { %p55_p2 = scmp.ne.s32.totalorder %s2114_s23, %s2110_s22  ;;  %p56_p4 = scmp.eq.s32.totalorder %s2134_s28, 0 }
  0x3a   : > { %s2781_s18 = smov (%p37_p1, %s36_s18), 0  ;;  %s2783_s19 = smov (!%p37_p1, %s39_s19), %s2130_s27 }
  0x3b   : > { %2758 = sst [smem:[#allocation19_spill]] %s2781_s18  ;;  %s44_s29 = ssub.s32 %s2126_s26, %s2781_s18 }
  0x3c   : > { %p41_p6 = scmp.ge.s32.totalorder %s2783_s19, 2  ;;  %p2759_p8 = scmp.ne.s32.totalorder %s2751_s8, 0 }
  0x3d   : > { %p2302_p10 = por %p56_p4, %p55_p2  ;;  %p1879_p12 = scmp.lt.s32.totalorder %s2134_s28, 4 }
  0x3e   : > { %p2298_p11 = por %p2759_p8, %p55_p2  ;;  %s2785_s19 = smov (%p41_p6, %s2783_s19), 0 }
  0x3f   : > { %2762 = sst [smem:[#allocation20_spill]] %s2785_s19  ;;  %s247_s30 = sand.u32 1, %s2114_s23  }
  0x40   : > { %s1691_s12 = sshll.u32 %s2126_s26, 1  ;;  %s43_s15 = ssub.s32 %s2130_s27, %s2785_s19 }
  0x41   : > { %s45_s16 = sor.u32 %s44_s29, %s43_s15  ;;  %s1690_s17 = sshll.u32 %s247_s30, 4 }
  0x42   : > { %p46_p13 = scmp.eq.s32.totalorder %s45_s16, 0  ;;  %s1692_s8 = sshll.u32 %s2130_s27, 2 }
  0x43   : > { %s251_s1 = scalar_lea.vmem [#allocation2], %s1690_s17  ;;  %s257_s21 = sadd.s32 %s1692_s8, %s1691_s12 }
  0x44   : > { %s260_s18 = sshll.u32 %s251_s1, 4  ;;  %s1693_s6 = sshll.u32 %s257_s21, 7  ;;  %s2317_s18 = int_to_ptr.vmem [resolvable:$true] %s260_s18 }
  0x45   : > { %s2315_s10 = scalar_select %p46_p13, %s2114_s23, %s48_s20  }
  0x46   : > { %p2323_p0 = pnand %p1879_p12, %p2302_p10  ;;  %s2330_s29 = scalar_lea.hbm %s2728_s0, %s1693_s6 }
  0x47   : > { %s2332_s1 = scalar_lea.sflag [#allocation3], %s247_s30  ;;  %s1998_s21 = scalar_lea.hbm %s2330_s29, 256 }
  0x48   : > { %p1999_p3 = scmp.ne.s32.totalorder %s2330_s29, %s1998_s21  ;;  %p2000_p5 = pneg %p2323_p0 }
  0x49   : > { %s2003_s19 = scalar_lea.hbm %s2728_s0, 1024  ;;  %p2004_p1 = scmp.lt.u32.totalorder %s2330_s29, %s2728_s0 }
  0x4a   : > { %p2001_p7 = pnand %p2000_p5, %p1999_p3  ;;  %p2005_p2 = scmp.lt.u32.totalorder %s2003_s19, %s1998_s21 }
  0x4b   : > { %p2007_p6 = scmp.lt.u32.totalorder %s1998_s21, %s2330_s29 }
  0x4c   : > { %p2002_p9 = pneg %p2001_p7  ;;  %p2006_p4 = por %p2005_p2, %p2004_p1 }
  0x4e   : > { %p2008_p8 = por %p2007_p6, %p2006_p4 }
  0x50   : > { %p2009_p10 = pnand %p2008_p8, %p2002_p9 }
  0x52   : > { %2012 = shalt.err (!%p2009_p10)
}
  0x53   : > { %s2013_s30 = scalar_lea.vmem %s2317_s18, 256  ;;  %s2139_s12 = smov [#allocation2]  }
  0x54   : > { %p2014_p12 = scmp.ne.s32.totalorder %s2317_s18, %s2013_s30  ;;  %s2018_s15 = sshll.u32 %s2139_s12, 4  ;;  %s2019_s15 = int_to_ptr.vmem [resolvable:$false] %s2018_s15 }
  0x55   : > { %s2020_s16 = scalar_lea.vmem %s2019_s15, 512  ;;  %p2021_p7 = scmp.lt.s32.totalorder %s2317_s18, %s2019_s15 }
  0x56   : > { %p2016_p13 = pnand %p2014_p12, %p2000_p5  ;;  %p2022_p1 = scmp.lt.s32.totalorder %s2020_s16, %s2013_s30 }
  0x58   : > { %p2017_p3 = pneg %p2016_p13  ;;  %p2023_p2 = por %p2022_p1, %p2021_p7 }
  0x5a   : > { %p2024_p4 = pnand %p2023_p2, %p2017_p3 }
  0x5c   : > { %2027 = shalt.err (!%p2024_p4)
}
  0x5d   : > { %s2140_s17 = smov 128   ;;  %s2141_s8 = smov 8  }
  0x5e   : > { %1870 = dma.hbm_to_vmem [thread:$0]  (!%p2323_p0), %s2330_s29, 256, %s2317_s18, %s2332_s1, %s2140_s17, %s2140_s17, %s2141_s8  }
  0x5f   : > { %p2764_p5 = scmp.ne.s32.totalorder %s2755_s11, 0 }
  0x60   : > { %s2363_s21 = sand.u32 (!%p2764_p5), 1, %s2110_s22   ;;  %p2765_p9 = scmp.ne.s32.totalorder (!%p2764_p5), %s2752_s9, 0 }
  0x61   : > { %272 = sbr.rel (%p2764_p5) target bundleno = 833 (0x341), region = 40  ;;  %s1695_s20 = sshll.u32 (!%p2764_p5), %s2363_s21, 4 }
  0x62   : > { %s275_s26 = scalar_lea.sflag (!%p2764_p5), [#allocation3], %s2363_s21  ;;  %s278_s19 = scalar_lea.vmem (!%p2764_p5), [#allocation2], %s1695_s20 }
  0x68   : > { %2089 = dma.done.wait (%p2765_p9), %s275_s26, 256  }
  0x69   : > { %2091 = vsyncadd (%p2765_p9), %s275_s26, 4294967040  ;;  %p2766_p0 = scmp.ne.s32.totalorder %s2750_s7, 0 }
  0x6b   : > { %2093 = dma.done.wait (%p2766_p0), [#allocation6], 6144  }
  0x6c   : > { %2095 = vsyncadd (%p2766_p0), [#allocation6], 4294961152  ;;  %v319_v0 = vld [vmem:[%s278_s19] sm:$0xff]  ;;  %v320_v1 = vld [vmem:[%s278_s19 + $0x8] sm:$0xff]  ;;  %s2395_s18 = scalar_lea.vmem [#allocation7], %s1695_s20  ;;  %s2143_s6 = smov 96  }
  0x6d   : > { %321 = vadd.xlane.f32.xlu0 %v319_v0  ;;  %v365_v2 = vld [vmem:[#allocation5 + $0x8] sm:$0xff]  ;;  %v368_v3 = vld [vmem:[#allocation5 + $0x20] sm:$0xff]  ;;  %v367_v6 = vld [vmem:[#allocation5 + $0x18] sm:$0xff]  ;;  %s2144_s13 = smov 64   ;;  %s2145_s30 = smov 32  }
  0x6e   : > { %v364_v4 = vld [vmem:[#allocation5] sm:$0xff]  ;;  %v1781_v5 = vpack.c.bf16 %v368_v3, %v365_v2  ;;  %v371_v7 = vld [vmem:[#allocation5 + $0x38] sm:$0xff]  ;;  %v374_v8 = vld [vmem:[#allocation5 + $0x50] sm:$0xff]  ;;  %s1503_s12 = sshll.u32 %s2395_s18, 4  ;;  %s1721_s15 = sshll.u32 %s2118_s24, 1  ;;  %s2442_s12 = int_to_ptr.vmem [resolvable:$true] %s1503_s12 }
  0x6f   : > { %v1783_v9 = vpack.c.bf16 %v367_v6, %v364_v4  ;;  %v1785_v10 = vpack.c.bf16 %v374_v8, %v371_v7  ;;  %v366_v11 = vld [vmem:[#allocation5 + $0x10] sm:$0xff]  ;;  %v369_v12 = vld [vmem:[#allocation5 + $0x28] sm:$0xff]  ;;  %v380_v17 = vld [vmem:[#allocation5 + $0x80] sm:$0xff]  ;;  %v2142_v4 = vmov 0.0   ;;  %s1722_s16 = sshll.u32 %s2122_s25, 2  ;;  %s2767_s19 = sld [smem:[#allocation22_spill]] }
  0x70   : > { %v370_v13 = vld [vmem:[#allocation5 + $0x30] sm:$0xff]  ;;  %1782 = vmatprep.subr.bf16.mxu0 %v1781_v5  ;;  %v1813_v14 = vpack.c.bf16 %v369_v12, %v366_v11  ;;  %v373_v15 = vld [vmem:[#allocation5 + $0x48] sm:$0xff]  ;;  %v372_v19 = vld [vmem:[#allocation5 + $0x40] sm:$0xff]  ;;  %493 = vmatprep.mubr.f32.mxu0 %v2142_v4  ;;  %s1500_s17 = sadd.s32 %s1722_s16, %s1721_s15  ;;  %s1483_s7 = scalar_lea.sflag [#allocation4], %s2363_s21 }
  0x71   : > { %323 = vadd.xlane.f32.xlu0 %v320_v1  ;;  %v377_v16 = vld [vmem:[#allocation5 + $0x68] sm:$0xff]  ;;  %1784 = vmatpush1.bf16.msra.mxu0 %v1783_v9  ;;  %v1787_v18 = vpack.c.bf16 %v373_v15, %v370_v13  ;;  %v375_v20 = vld [vmem:[#allocation5 + $0x58] sm:$0xff]  ;;  %v376_v23 = vld [vmem:[#allocation5 + $0x60] sm:$0xff]  ;;  %s1723_s8 = sshll.u32 %s1500_s17, 7  ;;  %s2028_s9 = scalar_lea.vmem %s2442_s12, 256 }
  0x72   : > { %1786 = vmatprep.subr.bf16.mxu0 %v1785_v10  ;;  %1814 = vmatprep.subr.bf16.mxu1 %v1813_v14  ;;  %v1789_v21 = vpack.c.bf16 %v380_v17, %v377_v16  ;;  %v1817_v22 = vpack.c.bf16 %v375_v20, %v372_v19  ;;  %v379_v24 = vld [vmem:[#allocation5 + $0x78] sm:$0xff]  ;;  %v386_v35 = vld [vmem:[#allocation5 + $0xb0] sm:$0xff]  ;;  %v381_v38 = vld [vmem:[#allocation5 + $0x88] sm:$0xff]  ;;  %p2029_p6 = scmp.ne.s32.totalorder %s2442_s12, %s2028_s9  ;;  %s2146_s11 = smov [#allocation7]  }
  0x73   : > { %1816 = vmatpush3.bf16.msra.mxu1 %v1813_v14  ;;  %v1791_v25 = vpack.c.bf16 %v379_v24, %v376_v23  ;;  %v383_v34 = vld [vmem:[#allocation5 + $0x98] sm:$0xff]  ;;  %v378_v36 = vld [vmem:[#allocation5 + $0x70] sm:$0xff]  ;;  %v385_v40 = vld [vmem:[#allocation5 + $0xa8] sm:$0xff] }
  0x74   : > { %1818 = vmatprep.subr.bf16.mxu1 %v1817_v22  ;;  %v1793_v37 = vpack.c.bf16 %v386_v35, %v383_v34  ;;  %v382_v39 = vld [vmem:[#allocation5 + $0x90] sm:$0xff]  ;;  %v1821_v41 = vpack.c.bf16 %v381_v38, %v378_v36  ;;  %v389_v43 = vld [vmem:[#allocation5 + $0xc8] sm:$0xff]  ;;  %v392_v44 = vld [vmem:[#allocation5 + $0xe0] sm:$0xff]  ;;  %v414_v36 = vlaneseq  ;;  %p2030_p8 = pnand %p2029_p6, %p2298_p11 }
  0x75   : > { %1788 = vmatpush1.bf16.msra.mxu0 %v1787_v18  ;;  %v1795_v42 = vpack.c.bf16 %v385_v40, %v382_v39  ;;  %v384_v45 = vld [vmem:[#allocation5 + $0xa0] sm:$0xff]  ;;  %v1797_v46 = vpack.c.bf16 %v392_v44, %v389_v43  ;;  %v387_v47 = vld [vmem:[#allocation5 + $0xb8] sm:$0xff]  ;;  %v398_v53 = vld [vmem:[#allocation5 + $0x110] sm:$0xff]  ;;  %s2447_s5 = scalar_lea.hbm %s2767_s19, %s1723_s8 }
  0x76   : > { %1790 = vmatprep.subr.bf16.mxu0 %v1789_v21  ;;  %v388_v48 = vld [vmem:[#allocation5 + $0xc0] sm:$0xff]  ;;  %v391_v49 = vld [vmem:[#allocation5 + $0xd8] sm:$0xff]  ;;  %v1825_v50 = vpack.c.bf16 %v387_v47, %v384_v45  ;;  %v390_v54 = vld [vmem:[#allocation5 + $0xd0] sm:$0xff]  ;;  %p2031_p10 = pneg %p2030_p8 }
  0x77   : > { %1820 = vmatpush3.bf16.msra.mxu1 %v1817_v22  ;;  %v1799_v51 = vpack.c.bf16 %v391_v49, %v388_v48  ;;  %v395_v52 = vld [vmem:[#allocation5 + $0xf8] sm:$0xff]  ;;  %v393_v56 = vld [vmem:[#allocation5 + $0xe8] sm:$0xff]  ;;  %v394_v57 = vld [vmem:[#allocation5 + $0xf0] sm:$0xff] }
  0x78   : > { %1822 = vmatprep.subr.bf16.mxu1 %v1821_v41  ;;  %v1801_v55 = vpack.c.bf16 %v398_v53, %v395_v52  ;;  %v397_v58 = vld [vmem:[#allocation5 + $0x108] sm:$0xff]  ;;  %v1829_v59 = vpack.c.bf16 %v393_v56, %v390_v54  ;;  %v404_v62 = vld [vmem:[#allocation5 + $0x140] sm:$0xff]  ;;  %v403_v3 = vld [vmem:[#allocation5 + $0x138] sm:$0xff] }
  0x79   : > { %1792 = vmatpush1.bf16.msra.mxu0 %v1791_v25  ;;  %v1803_v60 = vpack.c.bf16 %v397_v58, %v394_v57  ;;  %v401_v61 = vld [vmem:[#allocation5 + $0x128] sm:$0xff]  ;;  %v396_v63 = vld [vmem:[#allocation5 + $0x100] sm:$0xff]  ;;  %v407_v7 = vld [vmem:[#allocation5 + $0x158] sm:$0xff] }
  0x7a   : > { %1794 = vmatprep.subr.bf16.mxu0 %v1793_v37  ;;  %v400_v2 = vld [vmem:[#allocation5 + $0x120] sm:$0xff]  ;;  %v410_v8 = vld [vmem:[#allocation5 + $0x170] sm:$0xff]  ;;  %v405_v11 = vld [vmem:[#allocation5 + $0x148] sm:$0xff]  ;;  %v2399_v37 = vshrl.u32 %v414_v36, 7 }
  0x7b   : > { %1824 = vmatpush3.bf16.msra.mxu1 %v1821_v41  ;;  %v1807_v6 = vpack.c.bf16 %v403_v3, %v400_v2  ;;  %v402_v9 = vld [vmem:[#allocation5 + $0x130] sm:$0xff]  ;;  %v1809_v10 = vpack.c.bf16 %v410_v8, %v407_v7  ;;  %v409_v13 = vld [vmem:[#allocation5 + $0x168] sm:$0xff]  ;;  %v408_v16 = vld [vmem:[#allocation5 + $0x160] sm:$0xff] }
  0x7c   : > { %1826 = vmatprep.subr.bf16.mxu1 %v1825_v50  ;;  %v406_v12 = vld [vmem:[#allocation5 + $0x150] sm:$0xff]  ;;  %v1837_v14 = vpack.c.bf16 %v405_v11, %v402_v9  ;;  %v411_v17 = vld [vmem:[#allocation5 + $0x178] sm:$0xff]  ;;  %v416_v38 = vsub.s32 0, %v2399_v37  ;;  %v424_v40 = vsub.s32 2, %v2399_v37  ;;  %v420_v43 = vsub.s32 1, %v2399_v37 }
  0x7d   : > { %1796 = vmatpush1.bf16.msra.mxu0 %v1795_v42  ;;  %v1811_v15 = vpack.c.bf16 %v409_v13, %v406_v12  ;;  %v1841_v18 = vpack.c.bf16 %v411_v17, %v408_v16 }
  0x7e   : > { %1798 = vmatprep.subr.bf16.mxu0 %v1797_v46 }
  0x7f   : > { %1828 = vmatpush3.bf16.msra.mxu1 %v1825_v50 }
  0x80   : > { %1830 = vmatprep.subr.bf16.mxu1 %v1829_v59 }
  0x81   : > { %1800 = vmatpush1.bf16.msra.mxu0 %v1799_v51 }
  0x82   : > { %1802 = vmatprep.subr.bf16.mxu0 %v1801_v55 }
  0x83   : > { %1832 = vmatpush3.bf16.msra.mxu1 %v1829_v59 }
  0x85   : > { %1804 = vmatpush1.bf16.msra.mxu0 %v1803_v60 }
  0xfa   : > { %v322_v26 = vpop.xlane.xlu0 %321 }
  0xfb   : > { %v326_v27 = vmul.f32 0.0078125, %v322_v26  ;;  %v1698_v26 = vld [vmem:[%s2731_s3] ss:$0 sm:$0xff] }
  0xfd   : > { %v2377_v28 = vsub.f32 %v319_v0, %v326_v27  ;;  %v1805_v0 = vpack.c.bf16 %v404_v62, %v401_v61 }
  0xfe   : > { %v324_v29 = vpop.xlane.xlu0 %323 }
  0xff   : > { %v327_v30 = vmul.f32 0.0078125, %v324_v29  ;;  %v330_v31 = vmul.f32 %v2377_v28, %v2377_v28  ;;  %1806 = vmatprep.subr.bf16.mxu0 %v1805_v0  ;;  %v1699_v29 = vld [vmem:[%s2732_s4] ss:$0 sm:$0xff] }
 0x100   : > { %1808 = vmatpush1.bf16.msra.mxu0 %v1807_v6 }
 0x101   : > { %v2381_v32 = vsub.f32 %v320_v1, %v327_v30  ;;  %332 = vadd.xlane.f32.xlu1 %v330_v31  ;;  %v399_v1 = vld [vmem:[#allocation5 + $0x118] sm:$0xff]  ;;  %1810 = vmatprep.subr.bf16.mxu0 %v1809_v10 }
 0x102   : > { %v1833_v5 = vpack.c.bf16 %v399_v1, %v396_v63 }
 0x103   : > { %v331_v33 = vmul.f32 %v2381_v32, %v2381_v32 }
 0x104   : > { %1834 = vmatprep.subr.bf16.mxu1 %v1833_v5  ;;  %1812 = vmatpush1.bf16.msra.mxu0 %v1811_v15 }
 0x105   : > { %334 = vadd.xlane.f32.xlu1 %v331_v33  ;;  %1836 = vmatpush3.bf16.msra.mxu1 %v1833_v5 }
 0x106   : > { %1838 = vmatprep.subr.bf16.mxu1 %v1837_v14 }
 0x109   : > { %1840 = vmatpush3.bf16.msra.mxu1 %v1837_v14 }
 0x10a   : > { %1842 = vmatprep.subr.bf16.mxu1 %v1841_v18 }
 0x10d   : > { %1844 = vmatpush3.bf16.msra.mxu1 %v1841_v18 }
 0x18e   : > { %v333_v19 = vpop.xlane.xlu1 %332 }
 0x18f   : > { %v336_v20 = vmul.f32 0.0078125, %v333_v19 }
 0x191   : > { %v338_v21 = vadd.f32 1e-12, %v336_v20 }
 0x192   : > { %v335_v22 = vpop.xlane.xlu1 %334 }
 0x193   : > { %1966 = vrsqrt.f32 %v338_v21  ;;  %v337_v23 = vmul.f32 0.0078125, %v335_v22 }
 0x195   : > { %v339_v24 = vadd.f32 1e-12, %v337_v23 }
 0x197   : > { %1968 = vrsqrt.f32 %v339_v24 }
 0x19d   : > { %v1967_v25 = vpop.eup %1966 }
 0x19e   : > { %v342_v27 = vmul.f32 %v1967_v25, %v2377_v28 }
 0x1a0   : > { %v351_v30 = vmul.f32 %v1698_v26, %v342_v27 }
 0x1a1   : > { %v1969_v31 = vpop.eup %1968 }
 0x1a2   : > { %v360_v33 = vadd.f32 %v1699_v29, %v351_v30  ;;  %v343_v34 = vmul.f32 %v1969_v31, %v2381_v32  ;;  %v412_v32 = vld [vmem:[%s2730_s2] sm:$0x7] }
 0x1a3   : > { %v417_v39 = vrot.slane %v412_v32, %v416_v38  ;;  %v425_v45 = vrot.slane %v412_v32, %v424_v40  ;;  %v421_v48 = vrot.slane %v412_v32, %v420_v43 }
 0x1a4   : > { %362 = vst [vmem:[%s2395_s18] sm:$0xff] %v360_v33  ;;  %494 = vmatmul.mubr.f32.vlgmr.msra.gmra.mrb[0].mxu0 %v360_v33  ;;  %1778 = vmatprep.mubr.f32.mxu1 %v360_v33  ;;  %v352_v35 = vmul.f32 %v1698_v26, %v343_v34 }
 0x1a5   : > { %499 = vmatprep.mubr.f32.mxu0 %v2142_v4 }
 0x1a6   : > { %v361_v28 = vadd.f32 %v1699_v29, %v352_v35 }
 0x1a8   : > { %363 = vst [vmem:[%s2395_s18 + $0x8] sm:$0xff] %v361_v28  ;;  %500 = vmatmul.mubr.f32.gmra.mrb[2].mxu0 %v361_v28  ;;  %1779 = vmatmul.mubr.f32.vlgmr.msra.gmra.mrb[0].mxu1 %v361_v28  ;;  %s2032_s18 = sshll.u32 %s2146_s11, 4  ;;  %s2033_s18 = int_to_ptr.vmem [resolvable:$false] %s2032_s18 }
 0x1a9   : > { %s2034_s29 = scalar_lea.vmem %s2033_s18, 512  ;;  %p2035_p12 = scmp.lt.s32.totalorder %s2442_s12, %s2033_s18 }
 0x1aa   : > { %p2036_p13 = scmp.lt.s32.totalorder %s2034_s29, %s2028_s9 }
 0x1ac   : > { %p2037_p3 = por %p2036_p13, %p2035_p12 }
 0x1ae   : > { %p2038_p7 = pnand %p2037_p3, %p2031_p10 }
 0x277   : > { %v495_v41 = vpop.f32.mrb[0].mxu0 }
 0x278   : > { %v2406_v42 = vadd.f32 %v495_v41, %v417_v39  ;;  %v497_v44 = vpop.f32.mrb[1].mxu0 }
 0x279   : > { %v2415_v52 = vadd.f32 %v497_v44, %v421_v48 }
 0x27a   : > { %583 = vrot.lane.b32.xlu0 %v2406_v42, %s2143_s6  ;;  %589 = vrot.lane.b32.xlu1 %v2406_v42, %s2144_s13 }
 0x27b   : > { %v501_v46 = vpop.f32.mrb[2].mxu0  ;;  %v1780_v47 = vpop.f32.mrb[0].mxu1 }
 0x27c   : > { %v2411_v49 = vadd.f32 %v1780_v47, %v425_v45  ;;  %v503_v50 = vpop.f32.mrb[3].mxu0  ;;  %v572_v51 = vpop.f32.mrb[1].mxu1  ;;  %v2419_v53 = vadd.f32 %v501_v46, %v417_v39 }
 0x27d   : > { %v2425_v54 = vadd.f32 %v572_v51, %v425_v45  ;;  %v2429_v55 = vadd.f32 %v503_v50, %v421_v48 }
 0x27e   : > { %595 = vrot.lane.b32.xlu0 %v2406_v42, %s2145_s30  ;;  %625 = vrot.lane.b32.xlu1 %v2411_v49, %s2143_s6 }
 0x282   : > { %603 = vrot.lane.b32.xlu0 %v2415_v52, %s2143_s6  ;;  %631 = vrot.lane.b32.xlu1 %v2411_v49, %s2144_s13 }
 0x286   : > { %609 = vrot.lane.b32.xlu0 %v2415_v52, %s2144_s13  ;;  %585 = vrot.lane.b32.xlu1 %v2419_v53, %s2143_s6 }
 0x28a   : > { %615 = vrot.lane.b32.xlu0 %v2415_v52, %s2145_s30  ;;  %591 = vrot.lane.b32.xlu1 %v2419_v53, %s2144_s13 }
 0x28e   : > { %623 = vrot.lane.b32.xlu0 %v2425_v54, %s2143_s6  ;;  %597 = vrot.lane.b32.xlu1 %v2419_v53, %s2145_s30 }
 0x292   : > { %629 = vrot.lane.b32.xlu0 %v2425_v54, %s2144_s13  ;;  %605 = vrot.lane.b32.xlu1 %v2429_v55, %s2143_s6 }
 0x296   : > { %635 = vrot.lane.b32.xlu0 %v2425_v54, %s2145_s30  ;;  %611 = vrot.lane.b32.xlu1 %v2429_v55, %s2144_s13 }
 0x29a   : > { %617 = vrot.lane.b32.xlu1 %v2429_v55, %s2145_s30 }
 0x29e   : > { %637 = vrot.lane.b32.xlu1 %v2411_v49, %s2145_s30 }
 0x29f   : > { %2041 = shalt.err (!%p2038_p7)
}
 0x2a0   : > { %s2042_s1 = scalar_lea.hbm %s2447_s5, 256  ;;  %s2046_s30 = scalar_lea.hbm %s2767_s19, 1024 }
 0x2a1   : > { %p2043_p1 = scmp.ne.s32.totalorder %s2447_s5, %s2042_s1  ;;  %p2047_p5 = scmp.lt.u32.totalorder %s2447_s5, %s2767_s19 }
 0x2a2   : > { %p2048_p9 = scmp.lt.u32.totalorder %s2046_s30, %s2042_s1  ;;  %p2050_p6 = scmp.lt.u32.totalorder %s2042_s1, %s2447_s5 }
 0x2a3   : > { %p2044_p2 = pnand %p2043_p1, %p2298_p11 }
 0x2a4   : > { %p2049_p0 = por %p2048_p9, %p2047_p5 }
 0x2a5   : > { %p2045_p4 = pneg %p2044_p2 }
 0x2a6   : > { %p2051_p8 = por %p2050_p6, %p2049_p0 }
 0x2a8   : > { %p2052_p10 = pnand %p2051_p8, %p2045_p4 }
 0x2aa   : > { %2055 = shalt.err (!%p2052_p10)
}
 0x2ab   : > { %s2147_s8 = smov 128   ;;  %s2148_s20 = smov 8   ;;  %v2149_v56 = vmov 1983009808   ;;  %v2150_v58 = vmov 1934713408  }
 0x2ac   : > { %1853 = dma.vmem_to_hbm [thread:$0]  (%p2298_p11), %s2442_s12, 256, %s2447_s5, %s1483_s7, %s2147_s8, %s2147_s8, %s2148_s20   ;;  %v644_v57 = vunpack.c.l.s4 %v2149_v56  ;;  %v708_v59 = vunpack.c.l.s4 %v2150_v58  ;;  %vm1457_vm0 = vcmask 261120  }
 0x2ad   : > { %s1845_s12 = smul.u32 192, %s2363_s21  ;;  %s1488_s5 = scalar_lea.sflag [#allocation9], %s2363_s21 }
 0x2ae   : > { %v645_v60 = vunpack.c.0.s8 %v644_v57  ;;  %v709_v63 = vunpack.c.0.s8 %v708_v59 }
 0x2af   : > { %s2518_s26 = scalar_lea.vmem [#allocation8], %s1845_s12 }
 0x2b0   : > { %v2474_v0 = vsub.s32 %v645_v60, %v2399_v37  ;;  %v2481_v7 = vsub.s32 %v709_v63, %v2399_v37 }
 0x2ec   : > { %v590_v61 = vpop.permute.xlu1 %589  ;;  %v584_v62 = vpop.permute.xlu0 %583 }
 0x2ed   : > { %v641_v1 = vcombine.low %v2406_v42, %v590_v61  ;;  %v642_v2 = vcombine.high %v2406_v42, %v590_v61 }
 0x2ef   : > { %v649_v8 = vrot.slane %v641_v1, %v2474_v0  ;;  %v656_v9 = vrot.slane %v642_v2, %v2474_v0 }
 0x2f0   : > { %v2478_v3 = vpop.permute.xlu1 %625  ;;  %v596_v4 = vpop.permute.xlu0 %595 }
 0x2f1   : > { %v657_v5 = vcombine.low %v584_v62, %v596_v4  ;;  %v658_v6 = vcombine.high %v584_v62, %v596_v4 }
 0x2f3   : > { %v665_v10 = vrot.slane %v657_v5, %v2474_v0  ;;  %v672_v11 = vrot.slane %v658_v6, %v2474_v0 }
 0x2f4   : > { %v2487_v12 = vpop.permute.xlu1 %631  ;;  %v604_v13 = vpop.permute.xlu0 %603 }
 0x2f5   : > { %v705_v14 = vcombine.low %v649_v8, %v665_v10  ;;  %v706_v15 = vcombine.high %v649_v8, %v665_v10  ;;  %v721_v16 = vcombine.low %v656_v9, %v672_v11  ;;  %v722_v17 = vcombine.high %v656_v9, %v672_v11 }
 0x2f6   : > { %v981_v34 = vcombine.low %v2411_v49, %v2487_v12  ;;  %v982_v35 = vcombine.high %v2411_v49, %v2487_v12 }
 0x2f7   : > { %v713_v18 = vrot.slane %v705_v14, %v2481_v7  ;;  %v720_v19 = vrot.slane %v706_v15, %v2481_v7  ;;  %v729_v20 = vrot.slane %v721_v16, %v2481_v7  ;;  %v736_v21 = vrot.slane %v722_v17, %v2481_v7 }
 0x2f8   : > { %v586_v22 = vpop.permute.xlu1 %585  ;;  %v610_v23 = vpop.permute.xlu0 %609 }
 0x2f9   : > { %v1700_v24 = vcombine.low %v713_v18, %v720_v19  ;;  %v1702_v25 = vcombine.high %v713_v18, %v720_v19  ;;  %v1704_v26 = vcombine.low %v729_v20, %v736_v21  ;;  %v1706_v27 = vcombine.high %v729_v20, %v736_v21 }
 0x2fa   : > { %v673_v28 = vcombine.low %v2415_v52, %v610_v23  ;;  %v674_v36 = vcombine.high %v2415_v52, %v610_v23 }
 0x2fb   : > { %v1057_v29 = vrot.slane %v1700_v24, %v2474_v0  ;;  %v1073_v30 = vrot.slane %v1702_v25, %v2474_v0  ;;  %v1089_v31 = vrot.slane %v1704_v26, %v2474_v0  ;;  %v1105_v33 = vrot.slane %v1706_v27, %v2474_v0 }
 0x2fc   : > { %v592_v37 = vpop.permute.xlu1 %591  ;;  %v616_v38 = vpop.permute.xlu0 %615  ;;  %v681_v51 = vrot.slane %v673_v28, %v2474_v0  ;;  %v688_v52 = vrot.slane %v674_v36, %v2474_v0 }
 0x2fd   : > { %v1113_v32 = vcombine.low %v1057_v29, %v1073_v30  ;;  %v1114_v39 = vcombine.high %v1057_v29, %v1073_v30  ;;  %v1145_v40 = vcombine.low %v1089_v31, %v1105_v33  ;;  %v1146_v41 = vcombine.high %v1089_v31, %v1105_v33 }
 0x2fe   : > { %v845_v42 = vcombine.low %v2419_v53, %v592_v37  ;;  %v846_v43 = vcombine.high %v2419_v53, %v592_v37  ;;  %v689_v44 = vcombine.low %v604_v13, %v616_v38  ;;  %v690_v45 = vcombine.high %v604_v13, %v616_v38 }
 0x2ff   : > { %v1121_v46 = vrot.slane %v1113_v32, %v2481_v7  ;;  %v1128_v47 = vrot.slane %v1114_v39, %v2481_v7  ;;  %v1153_v48 = vrot.slane %v1145_v40, %v2481_v7  ;;  %v1160_v50 = vrot.slane %v1146_v41, %v2481_v7 }
 0x300   : > { %v697_v56 = vrot.slane %v689_v44, %v2474_v0  ;;  %v704_v57 = vrot.slane %v690_v45, %v2474_v0  ;;  %v598_v53 = vpop.permute.xlu1 %597  ;;  %v2514_v58 = vpop.permute.xlu0 %623  ;;  %v853_v5 = vrot.slane %v845_v42, %v2474_v0  ;;  %v860_v6 = vrot.slane %v846_v43, %v2474_v0 }
 0x301   : > { %v1177_v59 = vcombine.low %v1121_v46, %v1153_v48  ;;  %v1178_v60 = vcombine.high %v1121_v46, %v1153_v48  ;;  %v1179_v61 = vcombine.low %v1128_v47, %v1160_v50  ;;  %v1180_v62 = vcombine.high %v1128_v47, %v1160_v50 }
 0x302   : > { %v737_v63 = vcombine.low %v681_v51, %v697_v56  ;;  %v738_v1 = vcombine.high %v681_v51, %v697_v56  ;;  %v753_v2 = vcombine.low %v688_v52, %v704_v57  ;;  %v754_v4 = vcombine.high %v688_v52, %v704_v57 }
 0x303   : > { %1458 = vst.msk [vmem:[%s2518_s26] sm:$0xff] %vm1457_vm0, %v1177_v59  ;;  %1460 = vst.msk [vmem:[%s2518_s26 + $0x10] sm:$0xff] %vm1457_vm0, %v1178_v60  ;;  %v861_v8 = vcombine.low %v586_v22, %v598_v53  ;;  %v862_v9 = vcombine.high %v586_v22, %v598_v53 }
 0x304   : > { %1462 = vst.msk [vmem:[%s2518_s26 + $0x20] sm:$0xff] %vm1457_vm0, %v1179_v61  ;;  %1464 = vst.msk [vmem:[%s2518_s26 + $0x30] sm:$0xff] %vm1457_vm0, %v1180_v62  ;;  %v745_v10 = vrot.slane %v737_v63, %v2481_v7  ;;  %v752_v11 = vrot.slane %v738_v1, %v2481_v7  ;;  %v761_v13 = vrot.slane %v753_v2, %v2481_v7  ;;  %v2534_v15 = vpop.permute.xlu1 %605  ;;  %v630_v16 = vpop.permute.xlu0 %629 }
 0x305   : > { %v768_v14 = vrot.slane %v754_v4, %v2481_v7  ;;  %v869_v17 = vrot.slane %v861_v8, %v2474_v0  ;;  %v876_v18 = vrot.slane %v862_v9, %v2474_v0  ;;  %v777_v19 = vcombine.low %v2425_v54, %v630_v16 }
 0x306   : > { %v778_v20 = vcombine.high %v2425_v54, %v630_v16  ;;  %v1701_v21 = vcombine.low %v745_v10, %v752_v11  ;;  %v1703_v22 = vcombine.high %v745_v10, %v752_v11  ;;  %v2560_v8 = vrot.slane %v981_v34, %v2474_v0 }
 0x307   : > { %v1705_v23 = vcombine.low %v761_v13, %v768_v14  ;;  %v1707_v24 = vcombine.high %v761_v13, %v768_v14  ;;  %v909_v25 = vcombine.low %v853_v5, %v869_v17  ;;  %v910_v26 = vcombine.high %v853_v5, %v869_v17 }
 0x308   : > { %v925_v27 = vcombine.low %v860_v6, %v876_v18  ;;  %v926_v29 = vcombine.high %v860_v6, %v876_v18  ;;  %v1064_v30 = vrot.slane %v1701_v21, %v2474_v0  ;;  %v1080_v31 = vrot.slane %v1703_v22, %v2474_v0  ;;  %v612_v36 = vpop.permute.xlu1 %611  ;;  %v636_v6 = vpop.permute.xlu0 %635 }
 0x309   : > { %v1096_v33 = vrot.slane %v1705_v23, %v2474_v0  ;;  %v1112_v28 = vrot.slane %v1707_v24, %v2474_v0  ;;  %v917_v37 = vrot.slane %v909_v25, %v2481_v7  ;;  %v924_v54 = vrot.slane %v910_v26, %v2481_v7 }
 0x30a   : > { %v933_v38 = vrot.slane %v925_v27, %v2481_v7  ;;  %v940_v32 = vrot.slane %v926_v29, %v2481_v7  ;;  %v1129_v39 = vcombine.low %v1064_v30, %v1080_v31  ;;  %v1130_v40 = vcombine.high %v1064_v30, %v1080_v31 }
 0x30b   : > { %v1161_v41 = vcombine.low %v1096_v33, %v1112_v28  ;;  %v1162_v42 = vcombine.high %v1096_v33, %v1112_v28  ;;  %v1708_v43 = vcombine.low %v917_v37, %v924_v54  ;;  %v1710_v44 = vcombine.high %v917_v37, %v924_v54 }
 0x30c   : > { %v1712_v45 = vcombine.low %v933_v38, %v940_v32  ;;  %v1714_v46 = vcombine.high %v933_v38, %v940_v32  ;;  %v1137_v47 = vrot.slane %v1129_v39, %v2481_v7  ;;  %v1144_v48 = vrot.slane %v1130_v40, %v2481_v7  ;;  %v618_v52 = vpop.permute.xlu1 %617 }
 0x30d   : > { %v1169_v50 = vrot.slane %v1161_v41, %v2481_v7  ;;  %v1176_v51 = vrot.slane %v1162_v42, %v2481_v7  ;;  %v1193_v56 = vrot.slane %v1708_v43, %v2474_v0  ;;  %v1209_v57 = vrot.slane %v1710_v44, %v2474_v0 }
 0x30e   : > { %v1225_v53 = vrot.slane %v1712_v45, %v2474_v0  ;;  %v1241_v59 = vrot.slane %v1714_v46, %v2474_v0  ;;  %v2566_v9 = vrot.slane %v982_v35, %v2474_v0  ;;  %v877_v10 = vcombine.low %v2429_v55, %v612_v36 }
 0x30f   : > { %v1181_v60 = vcombine.low %v1137_v47, %v1169_v50  ;;  %v1182_v61 = vcombine.high %v1137_v47, %v1169_v50  ;;  %v1183_v62 = vcombine.low %v1144_v48, %v1176_v51  ;;  %v1184_v63 = vcombine.high %v1144_v48, %v1176_v51 }
 0x310   : > { %v1249_v1 = vcombine.low %v1193_v56, %v1209_v57  ;;  %v1250_v2 = vcombine.high %v1193_v56, %v1209_v57  ;;  %v1281_v4 = vcombine.low %v1225_v53, %v1241_v59  ;;  %v1282_v5 = vcombine.high %v1225_v53, %v1241_v59  ;;  %v638_v17 = vpop.permute.xlu1 %637 }
 0x311   : > { %1466 = vst.msk [vmem:[%s2518_s26 + $0x40] sm:$0xff] %vm1457_vm0, %v1181_v60  ;;  %1468 = vst.msk [vmem:[%s2518_s26 + $0x50] sm:$0xff] %vm1457_vm0, %v1182_v61  ;;  %v878_v11 = vcombine.high %v2429_v55, %v612_v36  ;;  %v785_v35 = vrot.slane %v777_v19, %v2474_v0  ;;  %v792_v14 = vrot.slane %v778_v20, %v2474_v0 }
 0x312   : > { %1470 = vst.msk [vmem:[%s2518_s26 + $0x60] sm:$0xff] %vm1457_vm0, %v1183_v62  ;;  %1472 = vst.msk [vmem:[%s2518_s26 + $0x70] sm:$0xff] %vm1457_vm0, %v1184_v63  ;;  %v1257_v34 = vrot.slane %v1249_v1, %v2481_v7  ;;  %v1264_v13 = vrot.slane %v1250_v2, %v2481_v7  ;;  %v1289_v49 = vrot.slane %v1281_v4, %v2481_v7 }
 0x313   : > { %v1296_v12 = vrot.slane %v1282_v5, %v2481_v7  ;;  %v793_v16 = vcombine.low %v2514_v58, %v636_v6  ;;  %v794_v55 = vcombine.high %v2514_v58, %v636_v6  ;;  %v893_v26 = vcombine.low %v2534_v15, %v618_v52 }
 0x314   : > { %v1313_v18 = vcombine.low %v1257_v34, %v1289_v49  ;;  %v1314_v21 = vcombine.high %v1257_v34, %v1289_v49  ;;  %v894_v19 = vcombine.high %v2534_v15, %v618_v52  ;;  %v885_v58 = vrot.slane %v877_v10, %v2474_v0 }
 0x315   : > { %v1315_v22 = vcombine.low %v1264_v13, %v1296_v12  ;;  %v1316_v23 = vcombine.high %v1264_v13, %v1296_v12  ;;  %v801_v24 = vrot.slane %v793_v16, %v2474_v0  ;;  %v808_v25 = vrot.slane %v794_v55, %v2474_v0 }
 0x316   : > { %1459 = vst.msk [vmem:[%s2518_s26 + $0x8] sm:$0xff] %vm1457_vm0, %v1313_v18  ;;  %1461 = vst.msk [vmem:[%s2518_s26 + $0x18] sm:$0xff] %vm1457_vm0, %v1314_v21  ;;  %v892_v20 = vrot.slane %v878_v11, %v2474_v0  ;;  %v997_v27 = vcombine.low %v2478_v3, %v638_v17  ;;  %v998_v29 = vcombine.high %v2478_v3, %v638_v17 }
 0x317   : > { %1463 = vst.msk [vmem:[%s2518_s26 + $0x28] sm:$0xff] %vm1457_vm0, %v1315_v22  ;;  %1465 = vst.msk [vmem:[%s2518_s26 + $0x38] sm:$0xff] %vm1457_vm0, %v1316_v23  ;;  %v809_v30 = vcombine.low %v785_v35, %v801_v24  ;;  %v810_v31 = vcombine.high %v785_v35, %v801_v24  ;;  %v825_v33 = vcombine.low %v792_v14, %v808_v25 }
 0x318   : > { %v826_v15 = vcombine.high %v792_v14, %v808_v25  ;;  %v901_v28 = vrot.slane %v893_v26, %v2474_v0  ;;  %v908_v36 = vrot.slane %v894_v19, %v2474_v0  ;;  %v2605_v37 = vrot.slane %v997_v27, %v2474_v0 }
 0x319   : > { %v2608_v54 = vrot.slane %v998_v29, %v2474_v0  ;;  %v817_v38 = vrot.slane %v809_v30, %v2481_v7  ;;  %v824_v32 = vrot.slane %v810_v31, %v2481_v7  ;;  %v833_v3 = vrot.slane %v825_v33, %v2481_v7 }
 0x31a   : > { %v840_v39 = vrot.slane %v826_v15, %v2481_v7  ;;  %v941_v40 = vcombine.low %v885_v58, %v901_v28  ;;  %v942_v41 = vcombine.high %v885_v58, %v901_v28  ;;  %v957_v42 = vcombine.low %v892_v20, %v908_v36 }
 0x31b   : > { %v958_v43 = vcombine.high %v892_v20, %v908_v36  ;;  %v1321_v44 = vcombine.low %v817_v38, %v824_v32  ;;  %v1716_v45 = vcombine.high %v817_v38, %v824_v32  ;;  %v1013_v58 = vcombine.low %v2560_v8, %v2605_v37 }
 0x31c   : > { %v1337_v46 = vcombine.low %v833_v3, %v840_v39  ;;  %v1717_v47 = vcombine.high %v833_v3, %v840_v39  ;;  %v949_v48 = vrot.slane %v941_v40, %v2481_v7  ;;  %v956_v50 = vrot.slane %v942_v41, %v2481_v7 }
 0x31d   : > { %v965_v51 = vrot.slane %v957_v42, %v2481_v7  ;;  %v972_v52 = vrot.slane %v958_v43, %v2481_v7  ;;  %v1328_v56 = vrot.slane %v1321_v44, %v2474_v0  ;;  %v1336_v57 = vrot.slane %v1716_v45, %v2474_v0 }
 0x31e   : > { %v1344_v53 = vrot.slane %v1337_v46, %v2474_v0  ;;  %v1352_v59 = vrot.slane %v1717_v47, %v2474_v0  ;;  %v1709_v60 = vcombine.low %v949_v48, %v956_v50  ;;  %v1711_v61 = vcombine.high %v949_v48, %v956_v50 }
 0x31f   : > { %v1713_v62 = vcombine.low %v965_v51, %v972_v52  ;;  %v1715_v63 = vcombine.high %v965_v51, %v972_v52  ;;  %v1353_v1 = vcombine.low %v1328_v56, %v1336_v57  ;;  %v1354_v2 = vcombine.high %v1328_v56, %v1336_v57 }
 0x320   : > { %v1369_v4 = vcombine.low %v1344_v53, %v1352_v59  ;;  %v1370_v5 = vcombine.high %v1344_v53, %v1352_v59  ;;  %v1200_v6 = vrot.slane %v1709_v60, %v2474_v0  ;;  %v1216_v10 = vrot.slane %v1711_v61, %v2474_v0 }
 0x321   : > { %v1232_v11 = vrot.slane %v1713_v62, %v2474_v0  ;;  %v1248_v34 = vrot.slane %v1715_v63, %v2474_v0  ;;  %v1361_v13 = vrot.slane %v1353_v1, %v2481_v7  ;;  %v1368_v49 = vrot.slane %v1354_v2, %v2481_v7 }
 0x322   : > { %v1377_v12 = vrot.slane %v1369_v4, %v2481_v7  ;;  %v1384_v35 = vrot.slane %v1370_v5, %v2481_v7  ;;  %v1265_v14 = vcombine.low %v1200_v6, %v1216_v10  ;;  %v1266_v16 = vcombine.high %v1200_v6, %v1216_v10 }
 0x323   : > { %v1297_v55 = vcombine.low %v1232_v11, %v1248_v34  ;;  %v1298_v17 = vcombine.high %v1232_v11, %v1248_v34  ;;  %v1014_v20 = vcombine.high %v2560_v8, %v2605_v37  ;;  %v1029_v27 = vcombine.low %v2566_v9, %v2608_v54 }
 0x324   : > { %v1385_v18 = vcombine.low %v1361_v13, %v1377_v12  ;;  %v1386_v21 = vcombine.high %v1361_v13, %v1377_v12  ;;  %v1387_v22 = vcombine.low %v1368_v49, %v1384_v35  ;;  %v1388_v23 = vcombine.high %v1368_v49, %v1384_v35 }
 0x325   : > { %v1273_v24 = vrot.slane %v1265_v14, %v2481_v7  ;;  %v1280_v25 = vrot.slane %v1266_v16, %v2481_v7  ;;  %v1305_v26 = vrot.slane %v1297_v55, %v2481_v7  ;;  %v1312_v19 = vrot.slane %v1298_v17, %v2481_v7 }
 0x326   : > { %1474 = vst.msk [vmem:[%s2518_s26 + $0x80] sm:$0xff] %vm1457_vm0, %v1385_v18  ;;  %1476 = vst.msk [vmem:[%s2518_s26 + $0x90] sm:$0xff] %vm1457_vm0, %v1386_v21  ;;  %v1030_v29 = vcombine.high %v2566_v9, %v2608_v54  ;;  %v1021_v28 = vrot.slane %v1013_v58, %v2481_v7  ;;  %v1028_v36 = vrot.slane %v1014_v20, %v2481_v7 }
 0x327   : > { %1478 = vst.msk [vmem:[%s2518_s26 + $0xa0] sm:$0xff] %vm1457_vm0, %v1387_v22  ;;  %1480 = vst.msk [vmem:[%s2518_s26 + $0xb0] sm:$0xff] %vm1457_vm0, %v1388_v23  ;;  %v1317_v30 = vcombine.low %v1273_v24, %v1305_v26  ;;  %v1318_v31 = vcombine.high %v1273_v24, %v1305_v26  ;;  %v1319_v33 = vcombine.low %v1280_v25, %v1312_v19 }
 0x328   : > { %v1320_v15 = vcombine.high %v1280_v25, %v1312_v19  ;;  %v1037_v38 = vrot.slane %v1029_v27, %v2481_v7  ;;  %v1044_v32 = vrot.slane %v1030_v29, %v2481_v7  ;;  %v1389_v8 = vcombine.low %v1021_v28, %v1028_v36 }
 0x329   : > { %1467 = vst.msk [vmem:[%s2518_s26 + $0x48] sm:$0xff] %vm1457_vm0, %v1317_v30  ;;  %1469 = vst.msk [vmem:[%s2518_s26 + $0x58] sm:$0xff] %vm1457_vm0, %v1318_v31  ;;  %v1718_v9 = vcombine.high %v1021_v28, %v1028_v36 }
 0x32a   : > { %1471 = vst.msk [vmem:[%s2518_s26 + $0x68] sm:$0xff] %vm1457_vm0, %v1319_v33  ;;  %1473 = vst.msk [vmem:[%s2518_s26 + $0x78] sm:$0xff] %vm1457_vm0, %v1320_v15  ;;  %v1405_v37 = vcombine.low %v1037_v38, %v1044_v32  ;;  %v1719_v54 = vcombine.high %v1037_v38, %v1044_v32  ;;  %v1396_v3 = vrot.slane %v1389_v8, %v2474_v0 }
 0x32b   : > { %v1404_v39 = vrot.slane %v1718_v9, %v2474_v0 }
 0x32c   : > { %v1412_v40 = vrot.slane %v1405_v37, %v2474_v0  ;;  %v1420_v41 = vrot.slane %v1719_v54, %v2474_v0 }
 0x32d   : > { %v1421_v42 = vcombine.low %v1396_v3, %v1404_v39  ;;  %v1422_v43 = vcombine.high %v1396_v3, %v1404_v39 }
 0x32e   : > { %v1437_v44 = vcombine.low %v1412_v40, %v1420_v41  ;;  %v1438_v45 = vcombine.high %v1412_v40, %v1420_v41 }
 0x32f   : > { %v1429_v46 = vrot.slane %v1421_v42, %v2481_v7  ;;  %v1436_v47 = vrot.slane %v1422_v43, %v2481_v7 }
 0x330   : > { %v1445_v48 = vrot.slane %v1437_v44, %v2481_v7  ;;  %v1452_v50 = vrot.slane %v1438_v45, %v2481_v7 }
 0x332   : > { %v1453_v51 = vcombine.low %v1429_v46, %v1445_v48  ;;  %v1454_v52 = vcombine.high %v1429_v46, %v1445_v48  ;;  %v1455_v56 = vcombine.low %v1436_v47, %v1452_v50  ;;  %v1456_v57 = vcombine.high %v1436_v47, %v1452_v50 }
 0x334   : > { %1475 = vst.msk [vmem:[%s2518_s26 + $0x88] sm:$0xff] %vm1457_vm0, %v1453_v51  ;;  %1477 = vst.msk [vmem:[%s2518_s26 + $0x98] sm:$0xff] %vm1457_vm0, %v1454_v52 }
 0x335   : > { %1479 = vst.msk [vmem:[%s2518_s26 + $0xa8] sm:$0xff] %vm1457_vm0, %v1455_v56  ;;  %1481 = vst.msk [vmem:[%s2518_s26 + $0xb8] sm:$0xff] %vm1457_vm0, %v1456_v57 }
 0x336   : > { %s1846_s7 = smul.u32 48, %s2122_s25  ;;  %s1537_s9 = sshll.u32 %s2518_s26, 4  ;;  %s1538_s9 = int_to_ptr.vmem [resolvable:$true] %s1537_s9 }
 0x337   : > { %s2151_s18 = smov 256   ;;  %s2768_s6 = sld [smem:[#allocation23_spill]] }
 0x338   : > { %s1518_s11 = sadd.s32 %s1846_s7, %s1721_s15  ;;  %1854 = sst [smem:[#allocation11]] (%p2298_p11), %s2151_s18 }
 0x339   : > { %s1725_s29 = sshll.u32 %s1518_s11, 7  ;;  %s2152_s30 = smov 512  }
 0x33a   : > { %1855 = sst [smem:[#allocation11 + $0x1]] (%p2298_p11), %s2152_s30  ;;  %s2153_s16 = smov 2  }
 0x33b   : > { %1856 = sst [smem:[#allocation11 + $0x2]] (%p2298_p11), %s2153_s16  ;;  %s2154_s25 = smov 128  }
 0x33c   : > { %1857 = sst [smem:[#allocation11 + $0x3]] (%p2298_p11), %s2154_s25  ;;  %s2155_s24 = smov 8  }
 0x33d   : > { %s1520_s13 = scalar_lea.hbm %s2768_s6, %s1725_s29  ;;  %1858 = sst [smem:[#allocation11 + $0x4]] (%p2298_p11), %s2154_s25 }
 0x33e   : > { %1859 = sst [smem:[#allocation11 + $0x5]] (%p2298_p11), %s2155_s24  ;;  %s2156_s15 = smov [#allocation10]  }
 0x33f   : > { %s2157_s17 = smov 0  }
 0x340   : > { %1860 = dma.general (%p2298_p11), %s1538_s9, 3072, %s1520_s13, %s1488_s5, %s2156_s15, [#allocation11], %s2157_s17, 0  }
 0x341 PF: > { %s2769_s8 = sld [smem:[#allocation16_spill]]  ;;  %s2770_s20 = sld [smem:[#allocation18_spill]] }
 0x342   : > { %p1881_p12 = scmp.ge.s32.totalorder %s2134_s28, 2 }
 0x347   : > { %s1565_s12 = sand.u32 1, %s2769_s8   ;;  %p2771_p13 = scmp.ne.s32.totalorder %s2770_s20, 0 }
 0x348   : > { %s1566_s26 = scalar_lea.sflag [#allocation4], %s1565_s12 }
 0x349   : > { %p1872_p3 = pnand %p1881_p12, %p2771_p13 }
 0x34b   : > { %2097 = dma.done.wait (!%p1872_p3), %s1566_s26, 256  }
 0x34c   : > { %2099 = vsyncadd (!%p1872_p3), %s1566_s26, 4294967040  ;;  %s1575_s7 = scalar_lea.sflag [#allocation9], %s1565_s12 }
 0x34d   : > { %2101 = dma.done.wait (!%p1872_p3), %s1575_s7, 3072  }
 0x34e   : > { %2103 = vsyncadd (!%p1872_p3), %s1575_s7, 4294964224  ;;  %s27_s28 = sadd.s32 1, %s2134_s28   ;;  %s2772_s24 = sld [smem:[#allocation17_spill]] }
 0x34f   : > { %p24_p7 = scmp.ge.s32.totalorder %s27_s28, 6   ;;  %s2773_s26 = sld [smem:[#allocation19_spill]] }
 0x350   : > { %s2774_s14 = sld [smem:[#allocation20_spill]]  ;;  %s2775_s21 = smov %s2110_s22 }
 0x351   : > { %s2776_s22 = smov %s2114_s23  ;;  %s2777_s23 = smov %s2315_s10 }
 0x352   : > { %s2778_s25 = smov %s2130_s27  ;;  %26 = sbr.rel (!%p24_p7) target bundleno = 14 (0xe), region = 111 }
 0x356   : > { %s2779_s27 = smov %s2774_s14 }
 0x359   :  { %1580 = vsyncpa [#allocation3], 1 }
 0x35a   :  { %1582 = vsyncpa [#allocation3 + $0x1], 1 }
 0x35b   :  { %1583 = vsyncpa [#allocation6], 1 }
 0x35c   :  { %1584 = vsyncpa [#allocation4], 1 }
 0x35d   :  { %1586 = vsyncpa [#allocation4 + $0x1], 1 }
 0x35e   :  { %1587 = vsyncpa [#allocation9], 1 }
 0x35f   :  { %1589 = vsyncpa [#allocation9 + $0x1], 1 }

</bundles_post_ra>
